<compile_context>
chip_gen: v5e
topology: v5e:2x2
jax: 0.10.0
libtpu: 0.0.40
codegen_flags: <defaults>
</compile_context>

<pallas_src>
import jax
import jax.numpy as jnp
from jax.experimental import pallas as pl
from jax.experimental.pallas import tpu as pltpu

EPS = 1e-5
# <= v7x's 64 MiB physical VMEM; huge headroom for these tiles on v5e/v6e too.
VMEM_LIMIT = 48 * 1024 * 1024


# --------------------------------------------------------------------------- #
# Kernel helpers
# --------------------------------------------------------------------------- #
def _fill_pad(pad_ref, y_rows, NB, H, WC):
    """Write y_rows (NB*H, WC) into rows 1..H of the (NB, H+2, WC) bf16 scratch
    and zero the two halo rows.  All stores are full-lane.  The halo is zeroed
    every step on purpose: under "parallel" semantics each core has its own
    scratch, so a program_id==0-only init would be unsafe (and this is just two
    full-lane row stores per image anyway)."""
    zrow = jnp.zeros((NB, 1, WC), pad_ref.dtype)
    pad_ref[:, 0:1, :] = zrow
    pad_ref[:, H + 1:H + 2, :] = zrow
    pad_ref[:, 1:H + 1, :] = y_rows.reshape(NB, H, WC).astype(pad_ref.dtype)


def _conv_rows(pad_ref, b_ref, NB, H, WC_in):
    """3x3 'same' conv of NB images as three lane-dense MXU matmuls.

    pad_ref: (NB, H+2, W*Cin) bf16 scratch, zero rows at 0 and H+1 per image.
    b_ref  : (3, W*Cin, W*Cout) bf16 banded weights (kw taps + W-padding folded in).
    returns (NB*H, W*Cout) f32 accumulator.
    """
    M = NB * H
    acc = jnp.dot(pad_ref[:, 0:H, :].reshape(M, WC_in), b_ref[0],
                  preferred_element_type=jnp.float32)
    acc = acc + jnp.dot(pad_ref[:, 1:H + 1, :].reshape(M, WC_in), b_ref[1],
                        preferred_element_type=jnp.float32)
    acc = acc + jnp.dot(pad_ref[:, 2:H + 2, :].reshape(M, WC_in), b_ref[2],
                        preferred_element_type=jnp.float32)
    return acc


def _write_stats(stats_ref, acc, WC_out):
    """Lane-dense per-tile BN partials: row-sums of z and z^2 per (w, c) column."""
    stats_ref[:, 0:1, :] = jnp.sum(acc, axis=0, keepdims=True).reshape(1, 1, WC_out)
    stats_ref[:, 1:2, :] = jnp.sum(acc * acc, axis=0, keepdims=True).reshape(1, 1, WC_out)


# --------------------------------------------------------------------------- #
# Kernels
# --------------------------------------------------------------------------- #
def conv1_kernel(x_ref, b_ref, z_ref, stats_ref, pad_ref):
    NB, Hp2, WCin = pad_ref.shape
    H = Hp2 - 2
    WCout = z_ref.shape[-1]
    _fill_pad(pad_ref, x_ref[...], NB, H, WCin)
    acc = _conv_rows(pad_ref, b_ref, NB, H, WCin)          # (NB*H, W*Cout) f32
    z_ref[...] = acc.astype(z_ref.dtype)
    _write_stats(stats_ref, acc, WCout)


def bn_relu_conv2_kernel(z1_ref, scale_ref, bias_ref, b_ref, z2_ref, stats_ref, pad_ref):
    NB, Hp2, WC = pad_ref.shape
    H = Hp2 - 2
    # BN1 affine (global batch stats finalized outside) + ReLU, lane-dense in f32.
    y = jnp.maximum(z1_ref[...].astype(jnp.float32) * scale_ref[...] + bias_ref[...], 0.0)
    _fill_pad(pad_ref, y, NB, H, WC)
    acc = _conv_rows(pad_ref, b_ref, NB, H, WC)             # (NB*H, W*C) f32
    z2_ref[...] = acc.astype(z2_ref.dtype)
    _write_stats(stats_ref, acc, WC)


def bn_add_relu_kernel(z2_ref, x_ref, scale_ref, bias_ref, out_ref):
    # Lane-dense elementwise epilogue: BN2 affine + residual + ReLU.
    out_ref[...] = jnp.maximum(
        z2_ref[...].astype(jnp.float32) * scale_ref[...] + bias_ref[...] + x_ref[...],
        0.0)


# --------------------------------------------------------------------------- #
# Wrapper helpers
# --------------------------------------------------------------------------- #
def _banded_weights(w_oihw, W):
    """PyTorch OIHW (Cout, Cin, 3, 3) -> (3, W*Cin, W*Cout) bf16 banded matrices.

    B[kh, w_in*Cin + ci, w_out*Cout + co] = w[co, ci, kh, kw] with kw = w_in - w_out + 1
    (out-of-range w_in simply drops out, which implements the width zero-padding).
    """
    Cout, Cin = w_oihw.shape[0], w_oihw.shape[1]
    wk = jnp.transpose(w_oihw, (2, 3, 1, 0)).astype(jnp.float32)      # (3,3,Cin,Cout)
    idx = jnp.arange(W)
    kw = jnp.arange(3)
    ind = (idx[None, :, None] == idx[None, None, :] + kw[:, None, None] - 1)
    ind = ind.astype(jnp.float32)                                     # (kw, w_in, w_out)
    B = jnp.einsum("kab,hkio->haibo", ind, wk)                        # (3,Win,Cin,Wout,Cout)
    return B.reshape(3, W * Cin, W * Cout).astype(jnp.bfloat16)


def _finalize_bn(stats, gamma, beta, count, W, C):
    """Reduce per-tile lane-dense partials -> BN scale/bias tiled to (1, W*C)."""
    s = jnp.sum(stats[:, 0, :], axis=0).reshape(W, C).sum(axis=0)     # (C,)
    ss = jnp.sum(stats[:, 1, :], axis=0).reshape(W, C).sum(axis=0)    # (C,)
    mean = s / count
    var = jnp.maximum(ss / count - mean * mean, 0.0)   # biased (training-mode) var
    scale = gamma * jax.lax.rsqrt(var + EPS)
    bias = beta - mean * scale
    # Lane-dense (1, W*C) form, column order (w, c) matching the conv output layout.
    return jnp.tile(scale, W).reshape(1, W * C), jnp.tile(bias, W).reshape(1, W * C)


def _pick_nb(N, H):
    """Images per conv grid step: ~<=512 rows/tile, divisor of N, rows % 8 == 0,
    preferring an even grid length (v7x has 2 TensorCores)."""
    divs = [d for d in range(1, N + 1) if N % d == 0]
    good = [d for d in divs if d * H <= 512 and (d * H) % 8 == 0]
    if not good:
        return N                       # single whole-array tile (block == full dims)
    even = [d for d in good if (N // d) % 2 == 0]
    pool = even if even else good
    return max(pool)


def _pick_row_blk(total_rows):
    for cand in (512, 256, 128, 64, 32, 16, 8):
        if total_rows % cand == 0:
            return cand
    return total_rows


# --------------------------------------------------------------------------- #
# Forward
# --------------------------------------------------------------------------- #
@jax.jit
def basic_block_forward(x_nchw, w1, g1, b1, w2, g2, b2):
    """x_nchw: (N, Cin, H, W) f32. w*: PyTorch OIHW (Cout, Cin, 3, 3), bias=False.
    BatchNorm in training mode (batch statistics), matching a fresh nn.BatchNorm2d."""
    N, Cin, H, W = x_nchw.shape
    Cout = w1.shape[0]
    assert Cin == Cout, "identity residual requires in_filters == out_filters"
    # TODO(synk): stride != 1 / downsample branch not implemented.

    WC = W * Cout
    WCin = W * Cin
    x_nhwc = jnp.transpose(x_nchw, (0, 2, 3, 1)).astype(jnp.float32)
    x2d = x_nhwc.reshape(N * H, WCin)                 # lane-dense residual, f32
    x2d_bf = x2d.astype(jnp.bfloat16)                 # conv1 input (half DMA)

    B1 = _banded_weights(w1, W)                       # (3, W*Cin, W*Cout) bf16
    B2 = _banded_weights(w2, W)                       # (3, W*C,   W*C)    bf16

    NB = _pick_nb(N, H)
    n_tiles = N // NB
    rows_tile = NB * H
    count = jnp.float32(N * H * W)

    cparams = pltpu.CompilerParams(dimension_semantics=("parallel",),
                                   vmem_limit_bytes=VMEM_LIMIT)

    conv_flops = 2 * (N * H) * WCin * WC * 3          # banded-matmul flop count
    b_bytes = 3 * WCin * WC * 2
    z_bytes = N * H * WC * 2
    stats_bytes = n_tiles * 2 * WC * 4

    # ---- pass 1: conv1 (+ per-tile BN1 partial sums) ------------------------
    z1, stats1 = pl.pallas_call(
        conv1_kernel,
        out_shape=(jax.ShapeDtypeStruct((N * H, WC), jnp.bfloat16),
                   jax.ShapeDtypeStruct((n_tiles, 2, WC), jnp.float32)),
        grid=(n_tiles,),
        in_specs=[pl.BlockSpec((rows_tile, WCin), lambda i: (i, 0)),
                  pl.BlockSpec((3, WCin, WC), lambda i: (0, 0, 0))],
        out_specs=(pl.BlockSpec((rows_tile, WC), lambda i: (i, 0)),
                   pl.BlockSpec((1, 2, WC), lambda i: (i, 0, 0))),
        scratch_shapes=[pltpu.VMEM((NB, H + 2, WCin), jnp.bfloat16)],
        compiler_params=cparams,
        cost_estimate=pl.CostEstimate(
            flops=conv_flops, transcendentals=0,
            bytes_accessed=N * H * WCin * 2 + b_bytes + z_bytes + stats_bytes),
    )(x2d_bf, B1)

    scale1, bias1 = _finalize_bn(stats1, g1.astype(jnp.float32),
                                 b1.astype(jnp.float32), count, W, Cout)

    # ---- pass 2: BN1 + ReLU + conv2 (+ per-tile BN2 partial sums) -----------
    z2, stats2 = pl.pallas_call(
        bn_relu_conv2_kernel,
        out_shape=(jax.ShapeDtypeStruct((N * H, WC), jnp.bfloat16),
                   jax.ShapeDtypeStruct((n_tiles, 2, WC), jnp.float32)),
        grid=(n_tiles,),
        in_specs=[pl.BlockSpec((rows_tile, WC), lambda i: (i, 0)),
                  pl.BlockSpec((1, WC), lambda i: (0, 0)),
                  pl.BlockSpec((1, WC), lambda i: (0, 0)),
                  pl.BlockSpec((3, WC, WC), lambda i: (0, 0, 0))],
        out_specs=(pl.BlockSpec((rows_tile, WC), lambda i: (i, 0)),
                   pl.BlockSpec((1, 2, WC), lambda i: (i, 0, 0))),
        scratch_shapes=[pltpu.VMEM((NB, H + 2, WC), jnp.bfloat16)],
        compiler_params=cparams,
        cost_estimate=pl.CostEstimate(
            flops=conv_flops + 3 * N * H * WC, transcendentals=0,
            bytes_accessed=2 * z_bytes + b_bytes + 2 * WC * 4 + stats_bytes),
    )(z1, scale1, bias1, B2)

    scale2, bias2 = _finalize_bn(stats2, g2.astype(jnp.float32),
                                 b2.astype(jnp.float32), count, W, Cout)

    # ---- pass 3: BN2 + residual + ReLU (lane-dense, up to 512-row tiles) -----
    total_rows = N * H
    row_blk = _pick_row_blk(total_rows)
    row_grid = total_rows // row_blk

    out2d = pl.pallas_call(
        bn_add_relu_kernel,
        out_shape=jax.ShapeDtypeStruct((total_rows, WC), jnp.float32),
        grid=(row_grid,),
        in_specs=[pl.BlockSpec((row_blk, WC), lambda i: (i, 0)),
                  pl.BlockSpec((row_blk, WC), lambda i: (i, 0)),
                  pl.BlockSpec((1, WC), lambda i: (0, 0)),
                  pl.BlockSpec((1, WC), lambda i: (0, 0))],
        out_specs=pl.BlockSpec((row_blk, WC), lambda i: (i, 0)),
        compiler_params=cparams,
        cost_estimate=pl.CostEstimate(
            flops=4 * N * H * WC, transcendentals=0,
            bytes_accessed=z_bytes + total_rows * WC * 4 * 2 + 2 * WC * 4),
    )(z2, x2d, scale2, bias2)

    return jnp.transpose(out2d.reshape(N, H, W, Cout), (0, 3, 1, 2))   # back to NCHW


# --------------------------------------------------------------------------- #
# Pure-JAX f32 reference (matches PyTorch training-mode forward)
# --------------------------------------------------------------------------- #
def basic_block_reference(x, w1, g1, b1, w2, g2, b2):
    def conv(a, w):
        return jax.lax.conv_general_dilated(
            a, w, window_strides=(1, 1), padding=((1, 1), (1, 1)),
            dimension_numbers=("NCHW", "OIHW", "NCHW"))

    def bn(y, g, b):
        mean = jnp.mean(y, axis=(0, 2, 3), keepdims=True)
        var = jnp.mean((y - mean) ** 2, axis=(0, 2, 3), keepdims=True)
        return ((y - mean) * jax.lax.rsqrt(var + EPS)
                * g.reshape(1, -1, 1, 1) + b.reshape(1, -1, 1, 1))

    y = jnp.maximum(bn(conv(x, w1), g1, b1), 0.0)
    z = bn(conv(y, w2), g2, b2)
    return jnp.maximum(z + x, 0.0)


if __name__ == "__main__":
    N, C, H, W = 2, 16, 16, 16   # in_filters == out_filters == 16, stride=1

    key = jax.random.PRNGKey(0)
    kx, kw1, kw2, kg1, kb1, kg2, kb2 = jax.random.split(key, 7)

    x = jax.random.normal(kx, (N, C, H, W), dtype=jnp.float32)

    # Kaiming-style conv init (PyTorch OIHW layout), bias=False
    fan_in = C * 3 * 3
    std = (2.0 / fan_in) ** 0.5
    w1 = std * jax.random.normal(kw1, (C, C, 3, 3), dtype=jnp.float32)
    w2 = std * jax.random.normal(kw2, (C, C, 3, 3), dtype=jnp.float32)

    # BN affine params (perturbed from gamma=1 / beta=0 to exercise the math)
    g1 = 1.0 + 0.1 * jax.random.normal(kg1, (C,), dtype=jnp.float32)
    b1 = 0.1 * jax.random.normal(kb1, (C,), dtype=jnp.float32)
    g2 = 1.0 + 0.1 * jax.random.normal(kg2, (C,), dtype=jnp.float32)
    b2 = 0.1 * jax.random.normal(kb2, (C,), dtype=jnp.float32)

    out = jax.block_until_ready(basic_block_forward(x, w1, g1, b1, w2, g2, b2))
    ref = basic_block_reference(x, w1, g1, b1, w2, g2, b2)
    assert out.shape == (N, C, H, W)

    # Conv matmuls run with bf16 operands on the MXU (f32 accumulation / f32 BN
    # stats) and intermediates are stored bf16, so compare at bf16 tolerance.
    err = float(jnp.max(jnp.abs(out - ref)))
    assert jnp.allclose(out, ref, atol=5e-2, rtol=5e-2), f"max abs err {err}"

    print("KERNEL_OK")
</pallas_src>

<mosaic_0001>
module attributes {stable_mosaic.version = 11 : i64} {
  func.func @conv1_kernel(%arg0: i32, %arg1: memref<16x256xbf16, #tpu.memory_space<vmem>>, %arg2: memref<3x256x256xbf16, #tpu.memory_space<vmem>>, %arg3: memref<16x256xbf16, #tpu.memory_space<vmem>>, %arg4: memref<1x2x256xf32, #tpu.memory_space<vmem>>, %arg5: memref<1x18x256xbf16, #tpu.memory_space<vmem>>) attributes {dimension_semantics = [#tpu.dimension_semantics<parallel>], iteration_bounds = array<i64: 2>, scalar_prefetch = 0 : i64, scratch_operands = 1 : i64, tpu.core_type = #tpu.core_type<tc>, window_params = [{transform_indices = @transform_0, window_bounds = array<i64: 16, 256>}, {pipeline_mode = #tpu.pipeline_mode<synchronous>, transform_indices = @transform_1, window_bounds = array<i64: 3, 256, 256>}, {transform_indices = @transform_2, window_bounds = array<i64: 16, 256>}, {transform_indices = @transform_3, window_bounds = array<i64: 1, 2, 256>}]} {
    %c0 = arith.constant 0 : index
    %c0_0 = arith.constant 0 : index
    %0 = vector.load %arg1[%c0, %c0_0] : memref<16x256xbf16, #tpu.memory_space<vmem>>, vector<16x256xbf16>
    %cst = arith.constant 0.000000e+00 : bf16
    %1 = vector.broadcast %cst : bf16 to vector<1x1x256xbf16>
    %c0_1 = arith.constant 0 : index
    %c0_2 = arith.constant 0 : index
    %c0_3 = arith.constant 0 : index
    %2 = vector.load %arg5[%c0_1, %c0_2, %c0_3] : memref<1x18x256xbf16, #tpu.memory_space<vmem>>, vector<1x1x256xbf16>
    tpu.vector_store %arg5[%c0_1, %c0_2, %c0_3], %1 {strides = array<i32>} : memref<1x18x256xbf16, #tpu.memory_space<vmem>>, vector<1x1x256xbf16>,
    %c0_4 = arith.constant 0 : index
    %c17 = arith.constant 17 : index
    %c0_5 = arith.constant 0 : index
    %3 = vector.load %arg5[%c0_4, %c17, %c0_5] : memref<1x18x256xbf16, #tpu.memory_space<vmem>>, vector<1x1x256xbf16>
    tpu.vector_store %arg5[%c0_4, %c17, %c0_5], %1 {strides = array<i32>} : memref<1x18x256xbf16, #tpu.memory_space<vmem>>, vector<1x1x256xbf16>,
    %4 = vector.shape_cast %0 : vector<16x256xbf16> to vector<1x16x256xbf16>
    %c0_6 = arith.constant 0 : index
    %c1 = arith.constant 1 : index
    %c0_7 = arith.constant 0 : index
    %5 = vector.load %arg5[%c0_6, %c1, %c0_7] : memref<1x18x256xbf16, #tpu.memory_space<vmem>>, vector<1x16x256xbf16>
    tpu.vector_store %arg5[%c0_6, %c1, %c0_7], %4 {strides = array<i32>} : memref<1x18x256xbf16, #tpu.memory_space<vmem>>, vector<1x16x256xbf16>,
    %c0_8 = arith.constant 0 : index
    %c0_9 = arith.constant 0 : index
    %c0_10 = arith.constant 0 : index
    %6 = vector.load %arg5[%c0_8, %c0_9, %c0_10] : memref<1x18x256xbf16, #tpu.memory_space<vmem>>, vector<1x16x256xbf16>
    %7 = vector.shape_cast %6 : vector<1x16x256xbf16> to vector<16x256xbf16>
    %c0_11 = arith.constant 0 : index
    %c0_12 = arith.constant 0 : index
    %c0_13 = arith.constant 0 : index
    %8 = vector.load %arg2[%c0_11, %c0_12, %c0_13] : memref<3x256x256xbf16, #tpu.memory_space<vmem>>, vector<1x256x256xbf16>
    %9 = vector.shape_cast %8 : vector<1x256x256xbf16> to vector<256x256xbf16>
    %cst_14 = arith.constant dense<0.000000e+00> : vector<16x256xf32>
    %10 = tpu.matmul %7, %9, %cst_14 {dimension_numbers = #tpu.dot_dimension_numbers<[1], [0], [0], [1], [0, 0, 1, 1], [], []>} : vector<16x256xbf16>, vector<256x256xbf16>, vector<16x256xf32> -> vector<16x256xf32>
    %c0_15 = arith.constant 0 : index
    %c1_16 = arith.constant 1 : index
    %c0_17 = arith.constant 0 : index
    %11 = vector.load %arg5[%c0_15, %c1_16, %c0_17] : memref<1x18x256xbf16, #tpu.memory_space<vmem>>, vector<1x16x256xbf16>
    %12 = vector.shape_cast %11 : vector<1x16x256xbf16> to vector<16x256xbf16>
    %c1_18 = arith.constant 1 : index
    %c0_19 = arith.constant 0 : index
    %c0_20 = arith.constant 0 : index
    %13 = vector.load %arg2[%c1_18, %c0_19, %c0_20] : memref<3x256x256xbf16, #tpu.memory_space<vmem>>, vector<1x256x256xbf16>
    %14 = vector.shape_cast %13 : vector<1x256x256xbf16> to vector<256x256xbf16>
    %cst_21 = arith.constant dense<0.000000e+00> : vector<16x256xf32>
    %15 = tpu.matmul %12, %14, %cst_21 {dimension_numbers = #tpu.dot_dimension_numbers<[1], [0], [0], [1], [0, 0, 1, 1], [], []>} : vector<16x256xbf16>, vector<256x256xbf16>, vector<16x256xf32> -> vector<16x256xf32>
    %16 = arith.addf %10, %15 : vector<16x256xf32>
    %c0_22 = arith.constant 0 : index
    %c2 = arith.constant 2 : index
    %c0_23 = arith.constant 0 : index
    %17 = vector.load %arg5[%c0_22, %c2, %c0_23] : memref<1x18x256xbf16, #tpu.memory_space<vmem>>, vector<1x16x256xbf16>
    %18 = vector.shape_cast %17 : vector<1x16x256xbf16> to vector<16x256xbf16>
    %c2_24 = arith.constant 2 : index
    %c0_25 = arith.constant 0 : index
    %c0_26 = arith.constant 0 : index
    %19 = vector.load %arg2[%c2_24, %c0_25, %c0_26] : memref<3x256x256xbf16, #tpu.memory_space<vmem>>, vector<1x256x256xbf16>
    %20 = vector.shape_cast %19 : vector<1x256x256xbf16> to vector<256x256xbf16>
    %cst_27 = arith.constant dense<0.000000e+00> : vector<16x256xf32>
    %21 = tpu.matmul %18, %20, %cst_27 {dimension_numbers = #tpu.dot_dimension_numbers<[1], [0], [0], [1], [0, 0, 1, 1], [], []>} : vector<16x256xbf16>, vector<256x256xbf16>, vector<16x256xf32> -> vector<16x256xf32>
    %22 = arith.addf %16, %21 : vector<16x256xf32>
    %23 = arith.truncf %22 : vector<16x256xf32> to vector<16x256xbf16>
    %c0_28 = arith.constant 0 : index
    %c0_29 = arith.constant 0 : index
    %24 = vector.load %arg3[%c0_28, %c0_29] : memref<16x256xbf16, #tpu.memory_space<vmem>>, vector<16x256xbf16>
    tpu.vector_store %arg3[%c0_28, %c0_29], %23 {strides = array<i32>} : memref<16x256xbf16, #tpu.memory_space<vmem>>, vector<16x256xbf16>,
    %cst_30 = arith.constant dense<0.000000e+00> : vector<256xf32>
    %25 = vector.multi_reduction <add>, %22, %cst_30 [0] : vector<16x256xf32> to vector<256xf32>
    %26 = vector.shape_cast %25 : vector<256xf32> to vector<1x256xf32>
    %27 = vector.shape_cast %26 : vector<1x256xf32> to vector<1x1x256xf32>
    %c0_31 = arith.constant 0 : index
    %c0_32 = arith.constant 0 : index
    %c0_33 = arith.constant 0 : index
    %28 = vector.load %arg4[%c0_31, %c0_32, %c0_33] : memref<1x2x256xf32, #tpu.memory_space<vmem>>, vector<1x1x256xf32>
    tpu.vector_store %arg4[%c0_31, %c0_32, %c0_33], %27 {strides = array<i32>} : memref<1x2x256xf32, #tpu.memory_space<vmem>>, vector<1x1x256xf32>,
    %29 = arith.mulf %22, %22 : vector<16x256xf32>
    %cst_34 = arith.constant dense<0.000000e+00> : vector<256xf32>
    %30 = vector.multi_reduction <add>, %29, %cst_34 [0] : vector<16x256xf32> to vector<256xf32>
    %31 = vector.shape_cast %30 : vector<256xf32> to vector<1x256xf32>
    %32 = vector.shape_cast %31 : vector<1x256xf32> to vector<1x1x256xf32>
    %c0_35 = arith.constant 0 : index
    %c1_36 = arith.constant 1 : index
    %c0_37 = arith.constant 0 : index
    %33 = vector.load %arg4[%c0_35, %c1_36, %c0_37] : memref<1x2x256xf32, #tpu.memory_space<vmem>>, vector<1x1x256xf32>
    tpu.vector_store %arg4[%c0_35, %c1_36, %c0_37], %32 {strides = array<i32>} : memref<1x2x256xf32, #tpu.memory_space<vmem>>, vector<1x1x256xf32>,
    return
  }
  func.func @transform_0(%arg0: i32) -> (i32, i32) {
    %c0_i32 = arith.constant 0 : i32
    %c0_i32_0 = arith.constant 0 : i32
    return %arg0, %c0_i32 : i32, i32
  }
  func.func @transform_1(%arg0: i32) -> (i32, i32, i32) {
    %c0_i32 = arith.constant 0 : i32
    %c0_i32_0 = arith.constant 0 : i32
    %c0_i32_1 = arith.constant 0 : i32
    %c0_i32_2 = arith.constant 0 : i32
    return %c0_i32, %c0_i32_0, %c0_i32_1 : i32, i32, i32
  }
  func.func @transform_2(%arg0: i32) -> (i32, i32) {
    %c0_i32 = arith.constant 0 : i32
    %c0_i32_0 = arith.constant 0 : i32
    return %arg0, %c0_i32 : i32, i32
  }
  func.func @transform_3(%arg0: i32) -> (i32, i32, i32) {
    %c0_i32 = arith.constant 0 : i32
    %c0_i32_0 = arith.constant 0 : i32
    %c0_i32_1 = arith.constant 0 : i32
    return %arg0, %c0_i32, %c0_i32_0 : i32, i32, i32
  }
}

module attributes {stable_mosaic.version = 11 : i64} {
  func.func @bn_relu_conv2_kernel(%arg0: i32, %arg1: memref<16x256xbf16, #tpu.memory_space<vmem>>, %arg2: memref<1x256xf32, #tpu.memory_space<vmem>>, %arg3: memref<1x256xf32, #tpu.memory_space<vmem>>, %arg4: memref<3x256x256xbf16, #tpu.memory_space<vmem>>, %arg5: memref<16x256xbf16, #tpu.memory_space<vmem>>, %arg6: memref<1x2x256xf32, #tpu.memory_space<vmem>>, %arg7: memref<1x18x256xbf16, #tpu.memory_space<vmem>>) attributes {dimension_semantics = [#tpu.dimension_semantics<parallel>], iteration_bounds = array<i64: 2>, scalar_prefetch = 0 : i64, scratch_operands = 1 : i64, tpu.core_type = #tpu.core_type<tc>, window_params = [{transform_indices = @transform_0, window_bounds = array<i64: 16, 256>}, {pipeline_mode = #tpu.pipeline_mode<synchronous>, transform_indices = @transform_1, window_bounds = array<i64: 1, 256>}, {pipeline_mode = #tpu.pipeline_mode<synchronous>, transform_indices = @transform_2, window_bounds = array<i64: 1, 256>}, {pipeline_mode = #tpu.pipeline_mode<synchronous>, transform_indices = @transform_3, window_bounds = array<i64: 3, 256, 256>}, {transform_indices = @transform_4, window_bounds = array<i64: 16, 256>}, {transform_indices = @transform_5, window_bounds = array<i64: 1, 2, 256>}]} {
    %c0 = arith.constant 0 : index
    %c0_0 = arith.constant 0 : index
    %0 = vector.load %arg1[%c0, %c0_0] : memref<16x256xbf16, #tpu.memory_space<vmem>>, vector<16x256xbf16>
    %1 = arith.extf %0 : vector<16x256xbf16> to vector<16x256xf32>
    %c0_1 = arith.constant 0 : index
    %c0_2 = arith.constant 0 : index
    %2 = vector.load %arg2[%c0_1, %c0_2] : memref<1x256xf32, #tpu.memory_space<vmem>>, vector<1x256xf32>
    %3 = vector.broadcast %2 : vector<1x256xf32> to vector<16x256xf32>
    %4 = arith.mulf %1, %3 : vector<16x256xf32>
    %c0_3 = arith.constant 0 : index
    %c0_4 = arith.constant 0 : index
    %5 = vector.load %arg3[%c0_3, %c0_4] : memref<1x256xf32, #tpu.memory_space<vmem>>, vector<1x256xf32>
    %6 = vector.broadcast %5 : vector<1x256xf32> to vector<16x256xf32>
    %7 = arith.addf %4, %6 : vector<16x256xf32>
    %cst = arith.constant 0.000000e+00 : f32
    %8 = vector.broadcast %cst : f32 to vector<16x256xf32>
    %9 = arith.maximumf %7, %8 : vector<16x256xf32>
    %cst_5 = arith.constant 0.000000e+00 : bf16
    %10 = vector.broadcast %cst_5 : bf16 to vector<1x1x256xbf16>
    %c0_6 = arith.constant 0 : index
    %c0_7 = arith.constant 0 : index
    %c0_8 = arith.constant 0 : index
    %11 = vector.load %arg7[%c0_6, %c0_7, %c0_8] : memref<1x18x256xbf16, #tpu.memory_space<vmem>>, vector<1x1x256xbf16>
    tpu.vector_store %arg7[%c0_6, %c0_7, %c0_8], %10 {strides = array<i32>} : memref<1x18x256xbf16, #tpu.memory_space<vmem>>, vector<1x1x256xbf16>,
    %c0_9 = arith.constant 0 : index
    %c17 = arith.constant 17 : index
    %c0_10 = arith.constant 0 : index
    %12 = vector.load %arg7[%c0_9, %c17, %c0_10] : memref<1x18x256xbf16, #tpu.memory_space<vmem>>, vector<1x1x256xbf16>
    tpu.vector_store %arg7[%c0_9, %c17, %c0_10], %10 {strides = array<i32>} : memref<1x18x256xbf16, #tpu.memory_space<vmem>>, vector<1x1x256xbf16>,
    %13 = vector.shape_cast %9 : vector<16x256xf32> to vector<1x16x256xf32>
    %14 = arith.truncf %13 : vector<1x16x256xf32> to vector<1x16x256xbf16>
    %c0_11 = arith.constant 0 : index
    %c1 = arith.constant 1 : index
    %c0_12 = arith.constant 0 : index
    %15 = vector.load %arg7[%c0_11, %c1, %c0_12] : memref<1x18x256xbf16, #tpu.memory_space<vmem>>, vector<1x16x256xbf16>
    tpu.vector_store %arg7[%c0_11, %c1, %c0_12], %14 {strides = array<i32>} : memref<1x18x256xbf16, #tpu.memory_space<vmem>>, vector<1x16x256xbf16>,
    %c0_13 = arith.constant 0 : index
    %c0_14 = arith.constant 0 : index
    %c0_15 = arith.constant 0 : index
    %16 = vector.load %arg7[%c0_13, %c0_14, %c0_15] : memref<1x18x256xbf16, #tpu.memory_space<vmem>>, vector<1x16x256xbf16>
    %17 = vector.shape_cast %16 : vector<1x16x256xbf16> to vector<16x256xbf16>
    %c0_16 = arith.constant 0 : index
    %c0_17 = arith.constant 0 : index
    %c0_18 = arith.constant 0 : index
    %18 = vector.load %arg4[%c0_16, %c0_17, %c0_18] : memref<3x256x256xbf16, #tpu.memory_space<vmem>>, vector<1x256x256xbf16>
    %19 = vector.shape_cast %18 : vector<1x256x256xbf16> to vector<256x256xbf16>
    %cst_19 = arith.constant dense<0.000000e+00> : vector<16x256xf32>
    %20 = tpu.matmul %17, %19, %cst_19 {dimension_numbers = #tpu.dot_dimension_numbers<[1], [0], [0], [1], [0, 0, 1, 1], [], []>} : vector<16x256xbf16>, vector<256x256xbf16>, vector<16x256xf32> -> vector<16x256xf32>
    %c0_20 = arith.constant 0 : index
    %c1_21 = arith.constant 1 : index
    %c0_22 = arith.constant 0 : index
    %21 = vector.load %arg7[%c0_20, %c1_21, %c0_22] : memref<1x18x256xbf16, #tpu.memory_space<vmem>>, vector<1x16x256xbf16>
    %22 = vector.shape_cast %21 : vector<1x16x256xbf16> to vector<16x256xbf16>
    %c1_23 = arith.constant 1 : index
    %c0_24 = arith.constant 0 : index
    %c0_25 = arith.constant 0 : index
    %23 = vector.load %arg4[%c1_23, %c0_24, %c0_25] : memref<3x256x256xbf16, #tpu.memory_space<vmem>>, vector<1x256x256xbf16>
    %24 = vector.shape_cast %23 : vector<1x256x256xbf16> to vector<256x256xbf16>
    %cst_26 = arith.constant dense<0.000000e+00> : vector<16x256xf32>
    %25 = tpu.matmul %22, %24, %cst_26 {dimension_numbers = #tpu.dot_dimension_numbers<[1], [0], [0], [1], [0, 0, 1, 1], [], []>} : vector<16x256xbf16>, vector<256x256xbf16>, vector<16x256xf32> -> vector<16x256xf32>
    %26 = arith.addf %20, %25 : vector<16x256xf32>
    %c0_27 = arith.constant 0 : index
    %c2 = arith.constant 2 : index
    %c0_28 = arith.constant 0 : index
    %27 = vector.load %arg7[%c0_27, %c2, %c0_28] : memref<1x18x256xbf16, #tpu.memory_space<vmem>>, vector<1x16x256xbf16>
    %28 = vector.shape_cast %27 : vector<1x16x256xbf16> to vector<16x256xbf16>
    %c2_29 = arith.constant 2 : index
    %c0_30 = arith.constant 0 : index
    %c0_31 = arith.constant 0 : index
    %29 = vector.load %arg4[%c2_29, %c0_30, %c0_31] : memref<3x256x256xbf16, #tpu.memory_space<vmem>>, vector<1x256x256xbf16>
    %30 = vector.shape_cast %29 : vector<1x256x256xbf16> to vector<256x256xbf16>
    %cst_32 = arith.constant dense<0.000000e+00> : vector<16x256xf32>
    %31 = tpu.matmul %28, %30, %cst_32 {dimension_numbers = #tpu.dot_dimension_numbers<[1], [0], [0], [1], [0, 0, 1, 1], [], []>} : vector<16x256xbf16>, vector<256x256xbf16>, vector<16x256xf32> -> vector<16x256xf32>
    %32 = arith.addf %26, %31 : vector<16x256xf32>
    %33 = arith.truncf %32 : vector<16x256xf32> to vector<16x256xbf16>
    %c0_33 = arith.constant 0 : index
    %c0_34 = arith.constant 0 : index
    %34 = vector.load %arg5[%c0_33, %c0_34] : memref<16x256xbf16, #tpu.memory_space<vmem>>, vector<16x256xbf16>
    tpu.vector_store %arg5[%c0_33, %c0_34], %33 {strides = array<i32>} : memref<16x256xbf16, #tpu.memory_space<vmem>>, vector<16x256xbf16>,
    %cst_35 = arith.constant dense<0.000000e+00> : vector<256xf32>
    %35 = vector.multi_reduction <add>, %32, %cst_35 [0] : vector<16x256xf32> to vector<256xf32>
    %36 = vector.shape_cast %35 : vector<256xf32> to vector<1x256xf32>
    %37 = vector.shape_cast %36 : vector<1x256xf32> to vector<1x1x256xf32>
    %c0_36 = arith.constant 0 : index
    %c0_37 = arith.constant 0 : index
    %c0_38 = arith.constant 0 : index
    %38 = vector.load %arg6[%c0_36, %c0_37, %c0_38] : memref<1x2x256xf32, #tpu.memory_space<vmem>>, vector<1x1x256xf32>
    tpu.vector_store %arg6[%c0_36, %c0_37, %c0_38], %37 {strides = array<i32>} : memref<1x2x256xf32, #tpu.memory_space<vmem>>, vector<1x1x256xf32>,
    %39 = arith.mulf %32, %32 : vector<16x256xf32>
    %cst_39 = arith.constant dense<0.000000e+00> : vector<256xf32>
    %40 = vector.multi_reduction <add>, %39, %cst_39 [0] : vector<16x256xf32> to vector<256xf32>
    %41 = vector.shape_cast %40 : vector<256xf32> to vector<1x256xf32>
    %42 = vector.shape_cast %41 : vector<1x256xf32> to vector<1x1x256xf32>
    %c0_40 = arith.constant 0 : index
    %c1_41 = arith.constant 1 : index
    %c0_42 = arith.constant 0 : index
    %43 = vector.load %arg6[%c0_40, %c1_41, %c0_42] : memref<1x2x256xf32, #tpu.memory_space<vmem>>, vector<1x1x256xf32>
    tpu.vector_store %arg6[%c0_40, %c1_41, %c0_42], %42 {strides = array<i32>} : memref<1x2x256xf32, #tpu.memory_space<vmem>>, vector<1x1x256xf32>,
    return
  }
  func.func @transform_0(%arg0: i32) -> (i32, i32) {
    %c0_i32 = arith.constant 0 : i32
    %c0_i32_0 = arith.constant 0 : i32
    return %arg0, %c0_i32 : i32, i32
  }
  func.func @transform_1(%arg0: i32) -> (i32, i32) {
    %c0_i32 = arith.constant 0 : i32
    %c0_i32_0 = arith.constant 0 : i32
    %c0_i32_1 = arith.constant 0 : i32
    return %c0_i32, %c0_i32_0 : i32, i32
  }
  func.func @transform_2(%arg0: i32) -> (i32, i32) {
    %c0_i32 = arith.constant 0 : i32
    %c0_i32_0 = arith.constant 0 : i32
    %c0_i32_1 = arith.constant 0 : i32
    return %c0_i32, %c0_i32_0 : i32, i32
  }
  func.func @transform_3(%arg0: i32) -> (i32, i32, i32) {
    %c0_i32 = arith.constant 0 : i32
    %c0_i32_0 = arith.constant 0 : i32
    %c0_i32_1 = arith.constant 0 : i32
    %c0_i32_2 = arith.constant 0 : i32
    return %c0_i32, %c0_i32_0, %c0_i32_1 : i32, i32, i32
  }
  func.func @transform_4(%arg0: i32) -> (i32, i32) {
    %c0_i32 = arith.constant 0 : i32
    %c0_i32_0 = arith.constant 0 : i32
    return %arg0, %c0_i32 : i32, i32
  }
  func.func @transform_5(%arg0: i32) -> (i32, i32, i32) {
    %c0_i32 = arith.constant 0 : i32
    %c0_i32_0 = arith.constant 0 : i32
    %c0_i32_1 = arith.constant 0 : i32
    return %arg0, %c0_i32, %c0_i32_0 : i32, i32, i32
  }
}

module attributes {stable_mosaic.version = 11 : i64} {
  func.func @bn_add_relu_kernel(%arg0: i32, %arg1: memref<32x256xbf16, #tpu.memory_space<vmem>>, %arg2: memref<32x256xf32, #tpu.memory_space<vmem>>, %arg3: memref<1x256xf32, #tpu.memory_space<vmem>>, %arg4: memref<1x256xf32, #tpu.memory_space<vmem>>, %arg5: memref<32x256xf32, #tpu.memory_space<vmem>>) attributes {dimension_semantics = [#tpu.dimension_semantics<parallel>], iteration_bounds = array<i64: 1>, scalar_prefetch = 0 : i64, scratch_operands = 0 : i64, tpu.core_type = #tpu.core_type<tc>, window_params = [{transform_indices = @transform_0, window_bounds = array<i64: 32, 256>}, {transform_indices = @transform_1, window_bounds = array<i64: 32, 256>}, {pipeline_mode = #tpu.pipeline_mode<synchronous>, transform_indices = @transform_2, window_bounds = array<i64: 1, 256>}, {pipeline_mode = #tpu.pipeline_mode<synchronous>, transform_indices = @transform_3, window_bounds = array<i64: 1, 256>}, {transform_indices = @transform_4, window_bounds = array<i64: 32, 256>}]} {
    %c0 = arith.constant 0 : index
    %c0_0 = arith.constant 0 : index
    %0 = vector.load %arg1[%c0, %c0_0] : memref<32x256xbf16, #tpu.memory_space<vmem>>, vector<32x256xbf16>
    %1 = arith.extf %0 : vector<32x256xbf16> to vector<32x256xf32>
    %c0_1 = arith.constant 0 : index
    %c0_2 = arith.constant 0 : index
    %2 = vector.load %arg3[%c0_1, %c0_2] : memref<1x256xf32, #tpu.memory_space<vmem>>, vector<1x256xf32>
    %3 = vector.broadcast %2 : vector<1x256xf32> to vector<32x256xf32>
    %4 = arith.mulf %1, %3 : vector<32x256xf32>
    %c0_3 = arith.constant 0 : index
    %c0_4 = arith.constant 0 : index
    %5 = vector.load %arg4[%c0_3, %c0_4] : memref<1x256xf32, #tpu.memory_space<vmem>>, vector<1x256xf32>
    %6 = vector.broadcast %5 : vector<1x256xf32> to vector<32x256xf32>
    %7 = arith.addf %4, %6 : vector<32x256xf32>
    %c0_5 = arith.constant 0 : index
    %c0_6 = arith.constant 0 : index
    %8 = vector.load %arg2[%c0_5, %c0_6] : memref<32x256xf32, #tpu.memory_space<vmem>>, vector<32x256xf32>
    %9 = arith.addf %7, %8 : vector<32x256xf32>
    %cst = arith.constant 0.000000e+00 : f32
    %10 = vector.broadcast %cst : f32 to vector<32x256xf32>
    %11 = arith.maximumf %9, %10 : vector<32x256xf32>
    %c0_7 = arith.constant 0 : index
    %c0_8 = arith.constant 0 : index
    %12 = vector.load %arg5[%c0_7, %c0_8] : memref<32x256xf32, #tpu.memory_space<vmem>>, vector<32x256xf32>
    tpu.vector_store %arg5[%c0_7, %c0_8], %11 {strides = array<i32>} : memref<32x256xf32, #tpu.memory_space<vmem>>, vector<32x256xf32>,
    return
  }
  func.func @transform_0(%arg0: i32) -> (i32, i32) {
    %c0_i32 = arith.constant 0 : i32
    %c0_i32_0 = arith.constant 0 : i32
    return %arg0, %c0_i32 : i32, i32
  }
  func.func @transform_1(%arg0: i32) -> (i32, i32) {
    %c0_i32 = arith.constant 0 : i32
    %c0_i32_0 = arith.constant 0 : i32
    return %arg0, %c0_i32 : i32, i32
  }
  func.func @transform_2(%arg0: i32) -> (i32, i32) {
    %c0_i32 = arith.constant 0 : i32
    %c0_i32_0 = arith.constant 0 : i32
    %c0_i32_1 = arith.constant 0 : i32
    return %c0_i32, %c0_i32_0 : i32, i32
  }
  func.func @transform_3(%arg0: i32) -> (i32, i32) {
    %c0_i32 = arith.constant 0 : i32
    %c0_i32_0 = arith.constant 0 : i32
    %c0_i32_1 = arith.constant 0 : i32
    return %c0_i32, %c0_i32_0 : i32, i32
  }
  func.func @transform_4(%arg0: i32) -> (i32, i32) {
    %c0_i32 = arith.constant 0 : i32
    %c0_i32_0 = arith.constant 0 : i32
    return %arg0, %c0_i32 : i32, i32
  }
}

</mosaic_0001>

<bundles_post_ra>
// kernel: tile.23
= control target key start
LH: loop header
LB: loop body
LE: loop exit
PB: predicated region body
PF: predicated region fallthrough
CT: control target
= control target key end

     0   :  { %s28_s0 = inlined_call_operand.vmem [shape: f32[16], index: 0, kind: input, shape index: {}]   ;;  %s29_s1 = inlined_call_operand.vmem [shape: f32[16,16], index: 1, kind: output, shape index: {}]  }
   0x1   :  { %v4_v0 = vld [vmem:[%s28_s0] ss:$0 sm:$0xff] }
   0x2   :  { %5 = vst [vmem:[%s29_s1] sm:$0xff] %v4_v0 }
   0x3   :  { %8 = vst [vmem:[%s29_s1 + $0x8] sm:$0xff] %v4_v0 }

// kernel: tile.24
= control target key start
LH: loop header
LB: loop body
LE: loop exit
PB: predicated region body
PF: predicated region fallthrough
CT: control target
= control target key end

     0   :  { %s7_s6 = smov 3  ;;  %s21_s9 = smov 3  ;;  %vm4_vm0 = vcmask 130048   ;;  %vm11_vm1 = vcmask 1048448   ;;  %vm18_vm2 = vcmask 917248   ;;  %vm25_vm3 = vcmask 786048   ;;  %s129_s0 = inlined_call_operand.vmem [shape: f32[16,16], index: 0, kind: input, shape index: {}]   ;;  %s130_s1 = inlined_call_operand.vmem [shape: f32[1,256], index: 1, kind: output, shape index: {}]  }
   0x1   :  { %v67_v0 = vld [vmem:[%s129_s0 + $0x7] ss:$8 sm:%s7_s6]   ;;  %s82_s10 = smov 112   ;;  %v69_v1 = vld [vmem:[%s129_s0 + $0x5] ss:$8 sm:%s21_s9]   ;;  %s83_s13 = smov 80  }
   0x2   :  { %9 = vrot.lane.b32.xlu0 %v67_v0, %s82_s10  ;;  %23 = vrot.lane.b32.xlu1 %v69_v1, %s83_s13  ;;  %s14_s14 = smov 3  ;;  %s28_s15 = smov 3  ;;  %vm32_vm4 = vcmask 654848   ;;  %vm39_vm5 = vcmask 523648   ;;  %vm46_vm6 = vcmask 392448   ;;  %vm53_vm7 = vcmask 261248  }
   0x3   :  { %s35_s16 = smov 3  ;;  %v68_v3 = vld [vmem:[%s129_s0 + $0x6] ss:$8 sm:%s14_s14]   ;;  %s84_s21 = smov 48   ;;  %v70_v4 = vld [vmem:[%s129_s0 + $0x4] ss:$8 sm:%s28_s15]  }
   0x4   :  { %v71_v2 = vld [vmem:[%s129_s0 + $0x3] ss:$8 sm:%s35_s16]   ;;  %s42_s24 = smov 3  ;;  %s85_s25 = smov 96  }
   0x5   :  { %37 = vrot.lane.b32.xlu2 %v71_v2, %s84_s21  ;;  %s86_s26 = smov 64   ;;  %s49_s27 = smov 3  ;;  %v72_v5 = vld [vmem:[%s129_s0 + $0x2] ss:$8 sm:%s42_s24]  }
   0x6   :  { %v73_v6 = vld [vmem:[%s129_s0 + $0x1] ss:$8 sm:%s49_s27]   ;;  %s87_s3 = smov 32   ;;  %s88_s4 = smov 16  }
   0x7   :  { %s2_s5 = smov 3 }
   0x8   :  { %v3_v7 = vld [vmem:[%s129_s0] ss:$8 sm:%s2_s5]  }
   0x9   :  { %5 = vst.msk [vmem:[#allocation0] ss:$8 sm:$0x3] %vm4_vm0, %v3_v7  }
   0xa   :  { %16 = vrot.lane.b32.xlu0 %v68_v3, %s85_s25  ;;  %30 = vrot.lane.b32.xlu1 %v70_v4, %s86_s26 }
   0xd   :  { %44 = vrot.lane.b32.xlu2 %v72_v5, %s87_s3 }
  0x12   :  { %51 = vrot.lane.b32.xlu0 %v73_v6, %s88_s4 }
  0x5f   :  { %v38_v8 = vpop.permute.xlu2 %37  }
  0x67   :  { %v45_v9 = vpop.permute.xlu2 %44  }
  0x74   :  { %v10_v10 = vpop.permute.xlu0 %9   ;;  %v24_v11 = vpop.permute.xlu1 %23  }
  0x75   :  { %12 = vst.msk [vmem:[#allocation0] ss:$8 sm:$0x3] %vm11_vm1, %v10_v10  }
  0x7c   :  { %v17_v12 = vpop.permute.xlu0 %16   ;;  %v31_v13 = vpop.permute.xlu1 %30  }
  0x7d   :  { %19 = vst.msk [vmem:[#allocation0] ss:$8 sm:$0x3] %vm18_vm2, %v17_v12  }
  0x7e   :  { %26 = vst.msk [vmem:[#allocation0] ss:$8 sm:$0x3] %vm25_vm3, %v24_v11  }
  0x7f   :  { %33 = vst.msk [vmem:[#allocation0] ss:$8 sm:$0x3] %vm32_vm4, %v31_v13  }
  0x80   :  { %40 = vst.msk [vmem:[#allocation0] ss:$8 sm:$0x3] %vm39_vm5, %v38_v8  }
  0x81   :  { %47 = vst.msk [vmem:[#allocation0] ss:$8 sm:$0x3] %vm46_vm6, %v45_v9  }
  0x84   :  { %v52_v14 = vpop.permute.xlu0 %51  }
  0x85   :  { %54 = vst.msk [vmem:[#allocation0] ss:$8 sm:$0x3] %vm53_vm7, %v52_v14  }
  0x8c   :  { %v57_v15 = vld [vmem:[#allocation0] sm:$0x1]  ;;  %v62_v16 = vld [vmem:[#allocation0 + $0x8] sm:$0x1] }
  0x8d   :  { %60 = vst [vmem:[%s130_s1] sm:$0x1] %v57_v15 }
  0x8e   :  { %74 = vst [vmem:[%s130_s1 + $0x1] sm:$0x1] %v62_v16 }

// kernel: basic_block_forward.5
= control target key start
LH: loop header
LB: loop body
LE: loop exit
PB: predicated region body
PF: predicated region fallthrough
CT: control target
= control target key end

     0   :  { %s184_s0 = inlined_call_operand.vmem [shape: bf16[32,256], index: 0, kind: input, shape index: {}]   ;;  %s185_s2 = inlined_call_operand.vmem [shape: f32[1,256], index: 2, kind: input, shape index: {}]   ;;  %s186_s3 = inlined_call_operand.vmem [shape: f32[1,256], index: 3, kind: input, shape index: {}]   ;;  %s187_s1 = inlined_call_operand.vmem [shape: f32[32,256], index: 1, kind: input, shape index: {}]   ;;  %s188_s4 = inlined_call_operand.vmem [shape: f32[32,256], index: 4, kind: output, shape index: {}]  }
   0x1   :  { %v17_v0 = vld [vmem:[%s184_s0] sm:$0xff]  ;;  %v18_v7 = vld [vmem:[%s184_s0 + $0x8] sm:$0xff]  ;;  %v19_v12 = vld [vmem:[%s184_s0 + $0x10] sm:$0xff] }
   0x2   :  { %v29_v1 = vld [vmem:[%s185_s2] sm:$0x3]  ;;  %v21_v3 = vunpack.c.l.bf16 %v17_v0  ;;  %v22_v6 = vunpack.c.h.bf16 %v17_v0  ;;  %v23_v10 = vunpack.c.l.bf16 %v18_v7  ;;  %v24_v11 = vunpack.c.h.bf16 %v18_v7  ;;  %v20_v16 = vld [vmem:[%s184_s0 + $0x18] sm:$0xff]  ;;  %v58_v23 = vld [vmem:[%s187_s1 + $0x8] sm:$0xff] }
   0x3   :  { %v43_v2 = vld [vmem:[%s186_s3] sm:$0x3]  ;;  %v31_v4 = vperm.slane %v29_v1, 0  ;;  %v32_v8 = vperm.slane %v29_v1, 1  ;;  %v25_v14 = vunpack.c.l.bf16 %v19_v12  ;;  %v26_v15 = vunpack.c.h.bf16 %v19_v12  ;;  %v59_v24 = vld [vmem:[%s187_s1 + $0x10] sm:$0xff]  ;;  %v60_v25 = vld [vmem:[%s187_s1 + $0x18] sm:$0xff] }
   0x4   :  { %v45_v5 = vperm.slane %v43_v2, 0  ;;  %v46_v9 = vperm.slane %v43_v2, 1  ;;  %v57_v17 = vld [vmem:[%s187_s1] sm:$0xff]  ;;  %v27_v21 = vunpack.c.l.bf16 %v20_v16  ;;  %v28_v28 = vunpack.c.h.bf16 %v20_v16  ;;  %v62_v33 = vld [vmem:[%s187_s1 + $0x28] sm:$0xff]  ;;  %v63_v38 = vld [vmem:[%s187_s1 + $0x30] sm:$0xff] }
   0x5   :  { %v35_v13 = vmul.f32 %v31_v4, %v21_v3  ;;  %v36_v18 = vmul.f32 %v32_v8, %v22_v6  ;;  %v37_v19 = vmul.f32 %v31_v4, %v23_v10  ;;  %v38_v20 = vmul.f32 %v32_v8, %v24_v11  ;;  %v61_v32 = vld [vmem:[%s187_s1 + $0x20] sm:$0xff]  ;;  %v64_v44 = vld [vmem:[%s187_s1 + $0x38] sm:$0xff] }
   0x6   :  { %v39_v26 = vmul.f32 %v31_v4, %v25_v14  ;;  %v40_v27 = vmul.f32 %v32_v8, %v26_v15  ;;  %v41_v34 = vmul.f32 %v31_v4, %v27_v21  ;;  %v42_v39 = vmul.f32 %v32_v8, %v28_v28 }
   0x7   :  { %v49_v22 = vadd.f32 %v45_v5, %v35_v13  ;;  %v50_v29 = vadd.f32 %v46_v9, %v36_v18  ;;  %v51_v30 = vadd.f32 %v45_v5, %v37_v19  ;;  %v52_v31 = vadd.f32 %v46_v9, %v38_v20 }
   0x8   :  { %v53_v36 = vadd.f32 %v45_v5, %v39_v26  ;;  %v54_v37 = vadd.f32 %v46_v9, %v40_v27  ;;  %v55_v43 = vadd.f32 %v45_v5, %v41_v34  ;;  %v56_v48 = vadd.f32 %v46_v9, %v42_v39 }
   0x9   :  { %v65_v35 = vadd.f32 %v57_v17, %v49_v22  ;;  %v66_v40 = vadd.f32 %v58_v23, %v50_v29  ;;  %v67_v41 = vadd.f32 %v59_v24, %v51_v30  ;;  %v68_v42 = vadd.f32 %v60_v25, %v52_v31 }
   0xa   :  { %v69_v46 = vadd.f32 %v61_v32, %v53_v36  ;;  %v70_v47 = vadd.f32 %v62_v33, %v54_v37  ;;  %v71_v52 = vadd.f32 %v63_v38, %v55_v43  ;;  %v72_v54 = vadd.f32 %v64_v44, %v56_v48 }
   0xb   :  { %v73_v45 = vmax.f32 %v65_v35, 0.0  ;;  %v74_v49 = vmax.f32 %v66_v40, 0.0  ;;  %v75_v50 = vmax.f32 %v67_v41, 0.0  ;;  %v76_v51 = vmax.f32 %v68_v42, 0.0 }
   0xc   :  { %v77_v53 = vmax.f32 %v69_v46, 0.0  ;;  %v78_v55 = vmax.f32 %v70_v47, 0.0  ;;  %v79_v56 = vmax.f32 %v71_v52, 0.0  ;;  %v80_v57 = vmax.f32 %v72_v54, 0.0 }
   0xd   :  { %81 = vst [vmem:[%s188_s4] sm:$0xff] %v73_v45 }
   0xe   :  { %82 = vst [vmem:[%s188_s4 + $0x8] sm:$0xff] %v74_v49 }
   0xf   :  { %83 = vst [vmem:[%s188_s4 + $0x10] sm:$0xff] %v75_v50 }
  0x10   :  { %84 = vst [vmem:[%s188_s4 + $0x18] sm:$0xff] %v76_v51 }
  0x11   :  { %85 = vst [vmem:[%s188_s4 + $0x20] sm:$0xff] %v77_v53 }
  0x12   :  { %86 = vst [vmem:[%s188_s4 + $0x28] sm:$0xff] %v78_v55 }
  0x13   :  { %87 = vst [vmem:[%s188_s4 + $0x30] sm:$0xff] %v79_v56 }
  0x14   :  { %88 = vst [vmem:[%s188_s4 + $0x38] sm:$0xff] %v80_v57 }

// kernel: basic_block_forward.3
= control target key start
LH: loop header
LB: loop body
LE: loop exit
PB: predicated region body
PF: predicated region fallthrough
CT: control target
= control target key end

     0   :  { %s1801_s12 = smov 0   ;;  %s2533_s0 = inlined_call_operand.vmem [shape: bf16[32,256], index: 0, kind: input, shape index: {}]   ;;  %s2534_s1 = inlined_call_operand.vmem [shape: bf16[3,256,256], index: 1, kind: input, shape index: {}]   ;;  %s2535_s2 = inlined_call_operand.vmem [shape: bf16[32,256], index: 2, kind: output, shape index: {0}]   ;;  %s2536_s3 = inlined_call_operand.vmem [shape: f32[2,2,256], index: 3, kind: output, shape index: {1}]  }
   0x1 LB: > { %s1807_s13 = sadd.s32 4294967295, %s1779_s12   ;;  %p1206_p0 = scmp.ge.s32.totalorder %s1779_s12, 1  ;;  %s1779_s12 = sphi %s1801_s12, %s14_s12  }
   0x2   : > { %p142_p1 = scmp.lt.s32.totalorder %s1779_s12, 3 }
   0x4   : > { %p143_p2 = pnand %p1206_p0, %p142_p1 }
   0x5   : > { %s1207_s28 = sshll.u32 (!%p143_p2), %s1807_s13, 1  ;;  %p187_p4 = scmp.lt.s32.totalorder (!%p143_p2), %s1807_s13, 1 }
   0x6   : > { %146 = sbr.rel (%p143_p2) target bundleno = 275 (0x113), region = 28  ;;  %p2072_p3 = scmp.lt.s32.totalorder (!%p143_p2), %s1207_s28, 3 }
   0xb   : > { %v1305_v0 = vld [vmem:[%s2534_s1 + $0x170] sm:$0xf]  ;;  %v1716_v1 = vld [vmem:[%s2534_s1 + $0x174] sm:$0xf0]  ;;  %v1715_v5 = vld [vmem:[%s2534_s1 + $0x174] sm:$0xf] }
   0xc   : > { %v1369_v2 = vld [vmem:[%s2534_s1 + $0x1f0] sm:$0xf]  ;;  %v1306_v3 = vor.u32 %v1716_v1, %v1305_v0  ;;  %v1732_v4 = vld [vmem:[%s2534_s1 + $0x1f4] sm:$0xf0]  ;;  %v1307_v6 = vld [vmem:[%s2534_s1 + $0x178] sm:$0xf0] }
   0xd   : > { %v1370_v7 = vor.u32 %v1732_v4, %v1369_v2  ;;  %v1310_v8 = vor.u32 %v1715_v5, %v1307_v6  ;;  %v1731_v9 = vld [vmem:[%s2534_s1 + $0x1f4] sm:$0xf]  ;;  %v1371_v10 = vld [vmem:[%s2534_s1 + $0x1f8] sm:$0xf0]  ;;  %v1297_v11 = vld [vmem:[%s2534_s1 + $0x160] sm:$0xf] }
   0xe   : > { %515 = vmatpush.bf16.msra.mxu0 %v1306_v3  ;;  %v1374_v12 = vor.u32 %v1731_v9, %v1371_v10  ;;  %v1714_v13 = vld [vmem:[%s2534_s1 + $0x164] sm:$0xf0]  ;;  %v1361_v14 = vld [vmem:[%s2534_s1 + $0x1e0] sm:$0xf]  ;;  %v1713_v18 = vld [vmem:[%s2534_s1 + $0x164] sm:$0xf] }
   0xf   : > { %v1730_v15 = vld [vmem:[%s2534_s1 + $0x1e4] sm:$0xf0]  ;;  %529 = vmatpush.bf16.msra.mxu1 %v1370_v7  ;;  %543 = vmatpush.bf16.msra.mxu2 %v1310_v8  ;;  %v1298_v16 = vor.u32 %v1714_v13, %v1297_v11  ;;  %v1299_v19 = vld [vmem:[%s2534_s1 + $0x168] sm:$0xf0]  ;;  %v1729_v20 = vld [vmem:[%s2534_s1 + $0x1e4] sm:$0xf] }
  0x10   : > { %v1362_v17 = vor.u32 %v1730_v15, %v1361_v14  ;;  %557 = vmatpush.bf16.msra.mxu3 %v1374_v12  ;;  %v1302_v21 = vor.u32 %v1713_v18, %v1299_v19  ;;  %v1363_v22 = vld [vmem:[%s2534_s1 + $0x1e8] sm:$0xf0]  ;;  %v1289_v23 = vld [vmem:[%s2534_s1 + $0x150] sm:$0xf]  ;;  %v1712_v24 = vld [vmem:[%s2534_s1 + $0x154] sm:$0xf0] }
  0x11   : > { %v1366_v25 = vor.u32 %v1729_v20, %v1363_v22  ;;  %v1353_v26 = vld [vmem:[%s2534_s1 + $0x1d0] sm:$0xf]  ;;  %v1728_v27 = vld [vmem:[%s2534_s1 + $0x1d4] sm:$0xf0]  ;;  %v1711_v28 = vld [vmem:[%s2534_s1 + $0x154] sm:$0xf]  ;;  %v1290_v29 = vor.u32 %v1712_v24, %v1289_v23 }
  0x12   : > { %516 = vmatpush.bf16.msra.mxu0 %v1298_v16  ;;  %v1291_v30 = vld [vmem:[%s2534_s1 + $0x158] sm:$0xf0]  ;;  %v1727_v31 = vld [vmem:[%s2534_s1 + $0x1d4] sm:$0xf]  ;;  %v1354_v33 = vor.u32 %v1728_v27, %v1353_v26  ;;  %v1281_v35 = vld [vmem:[%s2534_s1 + $0x140] sm:$0xf] }
  0x13   : > { %v1355_v32 = vld [vmem:[%s2534_s1 + $0x1d8] sm:$0xf0]  ;;  %530 = vmatpush.bf16.msra.mxu1 %v1362_v17  ;;  %544 = vmatpush.bf16.msra.mxu2 %v1302_v21  ;;  %v1294_v34 = vor.u32 %v1711_v28, %v1291_v30  ;;  %v1710_v36 = vld [vmem:[%s2534_s1 + $0x144] sm:$0xf0]  ;;  %v1345_v37 = vld [vmem:[%s2534_s1 + $0x1c0] sm:$0xf] }
  0x14   : > { %558 = vmatpush.bf16.msra.mxu3 %v1366_v25  ;;  %v1358_v38 = vor.u32 %v1727_v31, %v1355_v32  ;;  %v1726_v39 = vld [vmem:[%s2534_s1 + $0x1c4] sm:$0xf0]  ;;  %v1709_v40 = vld [vmem:[%s2534_s1 + $0x144] sm:$0xf]  ;;  %v1283_v41 = vld [vmem:[%s2534_s1 + $0x148] sm:$0xf0]  ;;  %v1282_v44 = vor.u32 %v1710_v36, %v1281_v35 }
  0x15   : > { %v1725_v42 = vld [vmem:[%s2534_s1 + $0x1c4] sm:$0xf]  ;;  %v1347_v43 = vld [vmem:[%s2534_s1 + $0x1c8] sm:$0xf0]  ;;  %v1346_v45 = vor.u32 %v1726_v39, %v1345_v37  ;;  %v1286_v46 = vor.u32 %v1709_v40, %v1283_v41  ;;  %v1273_v47 = vld [vmem:[%s2534_s1 + $0x130] sm:$0xf] }
  0x16   : > { %517 = vmatpush.bf16.msra.mxu0 %v1290_v29  ;;  %v1708_v48 = vld [vmem:[%s2534_s1 + $0x134] sm:$0xf0]  ;;  %v1337_v49 = vld [vmem:[%s2534_s1 + $0x1b0] sm:$0xf]  ;;  %v1350_v50 = vor.u32 %v1725_v42, %v1347_v43  ;;  %v1707_v52 = vld [vmem:[%s2534_s1 + $0x134] sm:$0xf] }
  0x17   : > { %531 = vmatpush.bf16.msra.mxu1 %v1354_v33  ;;  %545 = vmatpush.bf16.msra.mxu2 %v1294_v34  ;;  %v1724_v51 = vld [vmem:[%s2534_s1 + $0x1b4] sm:$0xf0]  ;;  %v1275_v53 = vld [vmem:[%s2534_s1 + $0x138] sm:$0xf0]  ;;  %v1723_v54 = vld [vmem:[%s2534_s1 + $0x1b4] sm:$0xf]  ;;  %v1274_v56 = vor.u32 %v1708_v48, %v1273_v47 }
  0x18   : > { %559 = vmatpush.bf16.msra.mxu3 %v1358_v38  ;;  %v1339_v55 = vld [vmem:[%s2534_s1 + $0x1b8] sm:$0xf0]  ;;  %v1338_v57 = vor.u32 %v1724_v51, %v1337_v49  ;;  %v1278_v58 = vor.u32 %v1707_v52, %v1275_v53  ;;  %v1265_v59 = vld [vmem:[%s2534_s1 + $0x120] sm:$0xf]  ;;  %v1706_v60 = vld [vmem:[%s2534_s1 + $0x124] sm:$0xf0] }
  0x19   : > { %v1329_v61 = vld [vmem:[%s2534_s1 + $0x1a0] sm:$0xf]  ;;  %v1342_v62 = vor.u32 %v1723_v54, %v1339_v55  ;;  %v1722_v63 = vld [vmem:[%s2534_s1 + $0x1a4] sm:$0xf0]  ;;  %v1705_v0 = vld [vmem:[%s2534_s1 + $0x124] sm:$0xf]  ;;  %v1266_v4 = vor.u32 %v1706_v60, %v1265_v59 }
  0x1a   : > { %518 = vmatpush.bf16.msra.mxu0 %v1282_v44  ;;  %v1267_v1 = vld [vmem:[%s2534_s1 + $0x128] sm:$0xf0]  ;;  %v1721_v2 = vld [vmem:[%s2534_s1 + $0x1a4] sm:$0xf]  ;;  %v1330_v5 = vor.u32 %v1722_v63, %v1329_v61  ;;  %v1257_v7 = vld [vmem:[%s2534_s1 + $0x110] sm:$0xf] }
  0x1b   : > { %532 = vmatpush.bf16.msra.mxu1 %v1346_v45  ;;  %546 = vmatpush.bf16.msra.mxu2 %v1286_v46  ;;  %v1331_v3 = vld [vmem:[%s2534_s1 + $0x1a8] sm:$0xf0]  ;;  %v1270_v6 = vor.u32 %v1705_v0, %v1267_v1  ;;  %v1704_v8 = vld [vmem:[%s2534_s1 + $0x114] sm:$0xf0]  ;;  %v1321_v9 = vld [vmem:[%s2534_s1 + $0x190] sm:$0xf] }
  0x1c   : > { %560 = vmatpush.bf16.msra.mxu3 %v1350_v50  ;;  %v1334_v10 = vor.u32 %v1721_v2, %v1331_v3  ;;  %v1720_v11 = vld [vmem:[%s2534_s1 + $0x194] sm:$0xf0]  ;;  %v1703_v12 = vld [vmem:[%s2534_s1 + $0x114] sm:$0xf]  ;;  %v1259_v13 = vld [vmem:[%s2534_s1 + $0x118] sm:$0xf0]  ;;  %v1258_v16 = vor.u32 %v1704_v8, %v1257_v7 }
  0x1d   : > { %v1719_v14 = vld [vmem:[%s2534_s1 + $0x194] sm:$0xf]  ;;  %v1323_v15 = vld [vmem:[%s2534_s1 + $0x198] sm:$0xf0]  ;;  %v1249_v17 = vld [vmem:[%s2534_s1 + $0x100] sm:$0xf]  ;;  %v1322_v19 = vor.u32 %v1720_v11, %v1321_v9  ;;  %v1262_v20 = vor.u32 %v1703_v12, %v1259_v13 }
  0x1e   : > { %519 = vmatpush.bf16.msra.mxu0 %v1274_v56  ;;  %v1702_v18 = vld [vmem:[%s2534_s1 + $0x104] sm:$0xf0]  ;;  %v1313_v21 = vld [vmem:[%s2534_s1 + $0x180] sm:$0xf]  ;;  %v1701_v23 = vld [vmem:[%s2534_s1 + $0x104] sm:$0xf]  ;;  %v1326_v24 = vor.u32 %v1719_v14, %v1323_v15 }
  0x1f   : > { %533 = vmatpush.bf16.msra.mxu1 %v1338_v57  ;;  %547 = vmatpush.bf16.msra.mxu2 %v1278_v58  ;;  %v1718_v22 = vld [vmem:[%s2534_s1 + $0x184] sm:$0xf0]  ;;  %v1251_v25 = vld [vmem:[%s2534_s1 + $0x108] sm:$0xf0]  ;;  %v1717_v26 = vld [vmem:[%s2534_s1 + $0x184] sm:$0xf]  ;;  %v1250_v31 = vor.u32 %v1702_v18, %v1249_v17 }
  0x20   : > { %561 = vmatpush.bf16.msra.mxu3 %v1342_v62  ;;  %v1315_v27 = vld [vmem:[%s2534_s1 + $0x188] sm:$0xf0]  ;;  %v1433_v28 = vld [vmem:[%s2534_s1 + $0x70] sm:$0xf]  ;;  %v1684_v29 = vld [vmem:[%s2534_s1 + $0x74] sm:$0xf0]  ;;  %v1314_v35 = vor.u32 %v1718_v22, %v1313_v21  ;;  %v1254_v36 = vor.u32 %v1701_v23, %v1251_v25 }
  0x21   : > { %v1497_v30 = vld [vmem:[%s2534_s1 + $0xf0] sm:$0xf]  ;;  %v1700_v32 = vld [vmem:[%s2534_s1 + $0xf4] sm:$0xf0]  ;;  %v1683_v33 = vld [vmem:[%s2534_s1 + $0x74] sm:$0xf]  ;;  %v1318_v39 = vor.u32 %v1717_v26, %v1315_v27  ;;  %v1434_v40 = vor.u32 %v1684_v29, %v1433_v28 }
  0x22   : > { %520 = vmatpush.bf16.msra.mxu0 %v1266_v4  ;;  %v1435_v34 = vld [vmem:[%s2534_s1 + $0x78] sm:$0xf0]  ;;  %v1699_v37 = vld [vmem:[%s2534_s1 + $0xf4] sm:$0xf]  ;;  %v1425_v41 = vld [vmem:[%s2534_s1 + $0x60] sm:$0xf]  ;;  %v1498_v43 = vor.u32 %v1700_v32, %v1497_v30 }
  0x23   : > { %534 = vmatpush.bf16.msra.mxu1 %v1330_v5  ;;  %548 = vmatpush.bf16.msra.mxu2 %v1270_v6  ;;  %v1499_v38 = vld [vmem:[%s2534_s1 + $0xf8] sm:$0xf0]  ;;  %v1682_v42 = vld [vmem:[%s2534_s1 + $0x64] sm:$0xf0]  ;;  %v1438_v44 = vor.u32 %v1683_v33, %v1435_v34  ;;  %v1489_v45 = vld [vmem:[%s2534_s1 + $0xe0] sm:$0xf] }
  0x24   : > { %562 = vmatpush.bf16.msra.mxu3 %v1334_v10  ;;  %v1698_v46 = vld [vmem:[%s2534_s1 + $0xe4] sm:$0xf0]  ;;  %v1681_v47 = vld [vmem:[%s2534_s1 + $0x64] sm:$0xf]  ;;  %v1502_v48 = vor.u32 %v1699_v37, %v1499_v38  ;;  %v1427_v49 = vld [vmem:[%s2534_s1 + $0x68] sm:$0xf0]  ;;  %v1426_v55 = vor.u32 %v1682_v42, %v1425_v41 }
  0x25   : > { %v1697_v50 = vld [vmem:[%s2534_s1 + $0xe4] sm:$0xf]  ;;  %v1491_v51 = vld [vmem:[%s2534_s1 + $0xe8] sm:$0xf0]  ;;  %v2054_v52 = vld [vmem:[%s2534_s1 + $0x50] sm:$0xf]  ;;  %v1490_v59 = vor.u32 %v1698_v46, %v1489_v45  ;;  %v1430_v60 = vor.u32 %v1681_v47, %v1427_v49 }
  0x26   : > { %521 = vmatpush.bf16.msra.mxu0 %v1258_v16  ;;  %v2059_v53 = vld [vmem:[%s2534_s1 + $0x54] sm:$0xf0]  ;;  %vm195_vm0 = vcmask 1040384   ;;  %vm196_vm1 = vsmask.f32 256  ;;  %vm198_vm3 = vcmask 1044484   ;;  %v1494_v0 = vor.u32 %v1697_v50, %v1491_v51 }
  0x27   : > { %535 = vmatpush.bf16.msra.mxu1 %v1322_v19  ;;  %549 = vmatpush.bf16.msra.mxu2 %v1262_v20  ;;  %v202_v54 = vld [vmem:[#allocation2 + $0x8] sm:$0x11]  ;;  %v2065_v56 = vld [vmem:[%s2534_s1 + $0xd0] sm:$0xf]  ;;  %v2070_v57 = vld [vmem:[%s2534_s1 + $0xd4] sm:$0xf0]  ;;  %v1418_v8 = vor.u32 %v2059_v53, %v2054_v52 }
  0x28   : > { %563 = vmatpush.bf16.msra.mxu3 %v1326_v24  ;;  %vm2078_vm2 = vmand %vm195_vm0, %vm196_vm1  ;;  %vm199_vm4 = vsmask.f32 4352  ;;  %vm205_vm5 = vsmask.f32 7938  ;;  %v1679_v61 = vld [vmem:[%s2534_s1 + $0x54] sm:$0xf]  ;;  %v1482_v14 = vor.u32 %v2070_v57, %v2065_v56 }
  0x29   : > { %v1419_v62 = vld [vmem:[%s2534_s1 + $0x58] sm:$0xf0]  ;;  %vm2089_vm6 = vmand %vm198_vm3, %vm199_vm4  ;;  %vm207_vm7 = vsmask.f32 7954  ;;  %v1695_v1 = vld [vmem:[%s2534_s1 + $0xd4] sm:$0xf] }
  0x2a   : > { %522 = vmatpush.bf16.msra.mxu0 %v1250_v31  ;;  %v1483_v2 = vld [vmem:[%s2534_s1 + $0xd8] sm:$0xf0]  ;;  %s2553_s28 = smov (!%p2072_p3, %s1207_s28), 3  ;;  %vm201_vm8 = vmor %vm2089_vm6, %vm2078_vm2  ;;  %v1409_v3 = vld [vmem:[%s2534_s1 + $0x40] sm:$0xf]  ;;  %vm235_vm11 = vcmask 1043456   ;;  %v1422_v15 = vor.u32 %v1679_v61, %v1419_v62 }
  0x2b   : > { %536 = vmatpush.bf16.msra.mxu1 %v1314_v35  ;;  %550 = vmatpush.bf16.msra.mxu2 %v1254_v36  ;;  %v1678_v4 = vld [vmem:[%s2534_s1 + $0x44] sm:$0xf0]  ;;  %v203_v5 = vsel %vm201_vm8, 0, %v202_v54  ;;  %vm2120_vm9 = vmand %vm195_vm0, %vm205_vm5  ;;  %v210_v7 = vld [vmem:[#allocation2] sm:$0x11]  ;;  %s1666_s30 = sshll.u32 %s2553_s28, 3  ;;  %v1486_v18 = vor.u32 %v1695_v1, %v1483_v2 }
  0x2c   : > { %564 = vmatpush.bf16.msra.mxu3 %v1318_v39  ;;  %v1473_v9 = vld [vmem:[%s2534_s1 + $0xc0] sm:$0xf]  ;;  %v1694_v10 = vld [vmem:[%s2534_s1 + $0xc4] sm:$0xf0]  ;;  %v1677_v11 = vld [vmem:[%s2534_s1 + $0x44] sm:$0xf]  ;;  %s178_s10 = scalar_lea.vmem %s2533_s0, %s1666_s30  ;;  %v1410_v29 = vor.u32 %v1678_v4, %v1409_v3  ;;  %s185_s23 = scalar_lea.vmem %s2535_s2, %s1666_s30 }
  0x2d   : > { %v1411_v12 = vld [vmem:[%s2534_s1 + $0x48] sm:$0xf0]  ;;  %204 = vst [vmem:[#allocation2 + $0x8] sm:$0x11] %v203_v5  ;;  %vm2141_vm10 = vmand %vm198_vm3, %vm207_vm7  ;;  %v1693_v16 = vld [vmem:[%s2534_s1 + $0xc4] sm:$0xf]  ;;  %v1474_v33 = vor.u32 %v1694_v10, %v1473_v9 }
  0x2e   : > { %733 = vmatpush.bf16.msrb.mxu0 %v1434_v40  ;;  %v1475_v17 = vld [vmem:[%s2534_s1 + $0xc8] sm:$0xf0]  ;;  %vm209_vm12 = vmor %vm2141_vm10, %vm2120_vm9  ;;  %vm237_vm13 = vcmask 1047556   ;;  %v193_v19 = vld [vmem:[%s178_s10] sm:$0xff]  ;;  %vm213_vm14 = vsmask.f32 4368  ;;  %v1414_v34 = vor.u32 %v1677_v11, %v1411_v12 }
  0x2f   : > { %747 = vmatpush.bf16.msrb.mxu1 %v1498_v43  ;;  %761 = vmatpush.bf16.msrb.mxu2 %v1438_v44  ;;  %v194_v20 = vld [vmem:[%s178_s10 + $0x8] sm:$0xff]  ;;  %v211_v21 = vsel %vm209_vm12, 0, %v210_v7  ;;  %v216_v22 = vshrl.u32 %v193_v19, 16  ;;  %v219_v23 = vshll.u32 %v193_v19, 16  ;;  %vm2164_vm15 = vmand %vm235_vm11, %vm205_vm5  ;;  %v1401_v27 = vld [vmem:[%s2534_s1 + $0x30] sm:$0xf]  ;;  %v1478_v40 = vor.u32 %v1693_v16, %v1475_v17 }
  0x30   : > { %775 = vmatpush.bf16.msrb.mxu3 %v1502_v48  ;;  %212 = vst [vmem:[#allocation2] sm:$0x11] %v211_v21  ;;  %v224_v24 = vshrl.u32 %v194_v20, 16  ;;  %v227_v25 = vshll.u32 %v194_v20, 16  ;;  %v1676_v28 = vld [vmem:[%s2534_s1 + $0x34] sm:$0xf0]  ;;  %vm2176_vm3 = vmand %vm237_vm13, %vm207_vm7 }
  0x31   : > { %v1465_v31 = vld [vmem:[%s2534_s1 + $0xb0] sm:$0xf]  ;;  %v1692_v32 = vld [vmem:[%s2534_s1 + $0xb4] sm:$0xf0]  ;;  %vm2188_vm4 = vmor %vm196_vm1, %vm213_vm14  ;;  %v218_v36 = vrot.slane %v216_v22, 7  ;;  %v1402_v48 = vor.u32 %v1676_v28, %v1401_v27  ;;  %vm828_vm5 = vcmask 1046528  }
  0x32   : > { %734 = vmatpush.bf16.msrb.mxu0 %v1426_v55  ;;  %v226_v37 = vrot.slane %v224_v24, 7  ;;  %v1675_v38 = vld [vmem:[%s2534_s1 + $0x34] sm:$0xf]  ;;  %v1403_v39 = vld [vmem:[%s2534_s1 + $0x38] sm:$0xf0]  ;;  %vm239_vm1 = vmor %vm2176_vm3, %vm2164_vm15  ;;  %v1466_v49 = vor.u32 %v1692_v32, %v1465_v31  ;;  %s2555_s13 = smov (!%p187_p4, %s1807_s13), 1 }
  0x33   : > { %748 = vmatpush.bf16.msrb.mxu1 %v1490_v59  ;;  %762 = vmatpush.bf16.msrb.mxu2 %v1430_v60  ;;  %v1691_v41 = vld [vmem:[%s2534_s1 + $0xb4] sm:$0xf]  ;;  %v1467_v42 = vld [vmem:[%s2534_s1 + $0xb8] sm:$0xf0]  ;;  %v221_v43 = vor.u32 %v219_v23, %v218_v36  ;;  %v222_v44 = vrot.slane %v218_v36, 4  ;;  %v1406_v50 = vor.u32 %v1675_v38, %v1403_v39  ;;  %s1668_s28 = sshll.u32 %s2555_s13, 2 }
  0x34   : > { %776 = vmatpush.bf16.msrb.mxu3 %v1494_v0  ;;  %v229_v45 = vor.u32 %v227_v25, %v226_v37  ;;  %v231_v46 = vrot.slane %v226_v37, 4  ;;  %v240_v47 = vld [vmem:[#allocation2 + $0x8] sm:$0xff]  ;;  %v1393_v51 = vld [vmem:[%s2534_s1 + $0x20] sm:$0xf]  ;;  %v1470_v55 = vor.u32 %v1691_v41, %v1467_v42  ;;  %v1673_v59 = vld [vmem:[%s2534_s1 + $0x24] sm:$0xf]  ;;  %s191_s25 = scalar_lea.vmem %s2536_s3, %s1668_s28 }
  0x35   : > { %v1674_v52 = vld [vmem:[%s2534_s1 + $0x24] sm:$0xf0]  ;;  %v241_v54 = vsel %vm239_vm1, %v221_v43, %v240_v47  ;;  %v1457_v56 = vld [vmem:[%s2534_s1 + $0xa0] sm:$0xf]  ;;  %v1395_v2 = vld [vmem:[%s2534_s1 + $0x28] sm:$0xf0] }
  0x36   : > { %735 = vmatpush.bf16.msrb.mxu0 %v1418_v8  ;;  %v2216_v53 = vsel %vm2188_vm4, %v222_v44, %v229_v45  ;;  %v1690_v57 = vld [vmem:[%s2534_s1 + $0xa4] sm:$0xf0]  ;;  %242 = vst [vmem:[#allocation2 + $0x8] sm:$0xff] %v241_v54  ;;  %v318_v61 = vunpack.c.l.b16 %v241_v54  ;;  %v319_v0 = vunpack.c.h.b16 %v241_v54  ;;  %v1689_v4 = vld [vmem:[%s2534_s1 + $0xa4] sm:$0xf]  ;;  %v1394_v58 = vor.u32 %v1674_v52, %v1393_v51 }
  0x37   : > { %749 = vmatpush.bf16.msrb.mxu1 %v1482_v14  ;;  %763 = vmatpush.bf16.msrb.mxu2 %v1422_v15  ;;  %v244_v60 = vld [vmem:[#allocation2] sm:$0x11]  ;;  %v320_v62 = vunpack.c.l.b16 %v2216_v53  ;;  %v321_v1 = vunpack.c.h.b16 %v2216_v53  ;;  %v1459_v5 = vld [vmem:[%s2534_s1 + $0xa8] sm:$0xf0]  ;;  %v1458_v7 = vor.u32 %v1690_v57, %v1457_v56  ;;  %v1398_v8 = vor.u32 %v1673_v59, %v1395_v2  ;;  %v1385_v9 = vld [vmem:[%s2534_s1 + $0x10] sm:$0xf] }
  0x38   : > { %777 = vmatpush.bf16.msrb.mxu3 %v1486_v18  ;;  %v245_v3 = vsel %vm201_vm8, %v231_v46, %v244_v60  ;;  %v1672_v10 = vld [vmem:[%s2534_s1 + $0x14] sm:$0xf0]  ;;  %v1449_v11 = vld [vmem:[%s2534_s1 + $0x90] sm:$0xf]  ;;  %v1462_v12 = vor.u32 %v1689_v4, %v1459_v5  ;;  %v1671_v14 = vld [vmem:[%s2534_s1 + $0x14] sm:$0xf] }
  0x39   : > { %246 = vst [vmem:[#allocation2] sm:$0x11] %v245_v3  ;;  %v2250_v6 = vpack.c.b16 %v320_v62, %v318_v61  ;;  %v2254_v63 = vpack.c.b16 %v321_v1, %v319_v0  ;;  %v1688_v13 = vld [vmem:[%s2534_s1 + $0x94] sm:$0xf0]  ;;  %v1387_v15 = vld [vmem:[%s2534_s1 + $0x18] sm:$0xf0]  ;;  %v1386_v20 = vor.u32 %v1672_v10, %v1385_v9 }
  0x3a   : > { %736 = vmatpush.bf16.msrb.mxu0 %v1410_v29  ;;  %v1687_v16 = vld [vmem:[%s2534_s1 + $0x94] sm:$0xf]  ;;  %v1451_v17 = vld [vmem:[%s2534_s1 + $0x98] sm:$0xf0]  ;;  %v1377_v21 = vld [vmem:[%s2534_s1] sm:$0xf]  ;;  %v1450_v25 = vor.u32 %v1688_v13, %v1449_v11  ;;  %v1390_v26 = vor.u32 %v1671_v14, %v1387_v15 }
  0x3b   : > { %750 = vmatpush.bf16.msrb.mxu1 %v1474_v33  ;;  %764 = vmatpush.bf16.msrb.mxu2 %v1414_v34  ;;  %v332_v18 = vshll.u32 %v2250_v6, 16  ;;  %v344_v19 = vshll.u32 %v2254_v63, 16  ;;  %v1670_v22 = vld [vmem:[%s2534_s1 + $0x4] sm:$0xf0]  ;;  %v330_v23 = vshrl.u32 %v2250_v6, 16  ;;  %v342_v24 = vshrl.u32 %v2254_v63, 16 }
  0x3c   : > { %778 = vmatpush.bf16.msrb.mxu3 %v1478_v40  ;;  %v1441_v27 = vld [vmem:[%s2534_s1 + $0x80] sm:$0xf]  ;;  %v1454_v28 = vor.u32 %v1687_v16, %v1451_v17  ;;  %v1686_v29 = vld [vmem:[%s2534_s1 + $0x84] sm:$0xf0]  ;;  %v1669_v30 = vld [vmem:[%s2534_s1 + $0x4] sm:$0xf]  ;;  %v1378_v33 = vor.u32 %v1670_v22, %v1377_v21 }
  0x3d   : > { %v1379_v31 = vld [vmem:[%s2534_s1 + $0x8] sm:$0xf0]  ;;  %v1685_v34 = vld [vmem:[%s2534_s1 + $0x84] sm:$0xf]  ;;  %v334_v37 = vrot.slane %v332_v18, 1  ;;  %v346_v39 = vrot.slane %v344_v19, 1  ;;  %v1442_v40 = vor.u32 %v1686_v29, %v1441_v27 }
  0x3e   : > { %737 = vmatpush.bf16.msrb.mxu0 %v1402_v48  ;;  %v1443_v35 = vld [vmem:[%s2534_s1 + $0x88] sm:$0xf0]  ;;  %v1382_v41 = vor.u32 %v1669_v30, %v1379_v31  ;;  %vm328_vm2 = vsmask.f32 7424  ;;  %v1593_v45 = vld [vmem:[%s2534_s1 + $0x270] sm:$0xf] }
  0x3f   : > { %751 = vmatpush.bf16.msrb.mxu1 %v1466_v49  ;;  %765 = vmatpush.bf16.msrb.mxu2 %v1406_v50  ;;  %v1446_v44 = vor.u32 %v1685_v34, %v1443_v35  ;;  %v1748_v46 = vld [vmem:[%s2534_s1 + $0x274] sm:$0xf0]  ;;  %v1657_v47 = vld [vmem:[%s2534_s1 + $0x2f0] sm:$0xf]  ;;  %v335_v48 = vor.u32 %v334_v37, %v330_v23  ;;  %v347_v50 = vor.u32 %v346_v39, %v342_v24  ;;  %v1747_v54 = vld [vmem:[%s2534_s1 + $0x274] sm:$0xf] }
  0x40   : > { %779 = vmatpush.bf16.msrb.mxu3 %v1470_v55  ;;  %v281_v32 = vld [vmem:[#allocation2] sm:$0x11]  ;;  %v1764_v52 = vld [vmem:[%s2534_s1 + $0x2f4] sm:$0xf0]  ;;  %v1595_v55 = vld [vmem:[%s2534_s1 + $0x278] sm:$0xf0]  ;;  %v1594_v61 = vor.u32 %v1748_v46, %v1593_v45 }
  0x41   : > { %v322_v36 = vunpack.c.l.b16 %v281_v32  ;;  %v323_v38 = vunpack.c.h.b16 %v281_v32  ;;  %v1763_v56 = vld [vmem:[%s2534_s1 + $0x2f4] sm:$0xf]  ;;  %v1659_v57 = vld [vmem:[%s2534_s1 + $0x2f8] sm:$0xf0]  ;;  %v1658_v0 = vor.u32 %v1764_v52, %v1657_v47  ;;  %v1585_v2 = vld [vmem:[%s2534_s1 + $0x260] sm:$0xf] }
  0x42   : > { %738 = vmatpush.bf16.msrb.mxu0 %v1394_v58  ;;  %v1746_v3 = vld [vmem:[%s2534_s1 + $0x264] sm:$0xf0]  ;;  %v1598_v58 = vor.u32 %v1747_v54, %v1595_v55  ;;  %v1745_v10 = vld [vmem:[%s2534_s1 + $0x264] sm:$0xf]  ;;  %v1587_v11 = vld [vmem:[%s2534_s1 + $0x268] sm:$0xf0] }
  0x43   : > { %752 = vmatpush.bf16.msrb.mxu1 %v1458_v7  ;;  %766 = vmatpush.bf16.msrb.mxu2 %v1398_v8  ;;  %v2308_v42 = vpack.c.b16 %v322_v36, %v322_v36  ;;  %v2310_v43 = vpack.c.b16 %v323_v38, %v323_v38  ;;  %v1662_v7 = vor.u32 %v1763_v56, %v1659_v57  ;;  %v1649_v8 = vld [vmem:[%s2534_s1 + $0x2e0] sm:$0xf]  ;;  %v1762_v9 = vld [vmem:[%s2534_s1 + $0x2e4] sm:$0xf0]  ;;  %v1651_v13 = vld [vmem:[%s2534_s1 + $0x2e8] sm:$0xf0] }
  0x44   : > { %780 = vmatpush.bf16.msrb.mxu3 %v1462_v12  ;;  %v1761_v12 = vld [vmem:[%s2534_s1 + $0x2e4] sm:$0xf]  ;;  %v1586_v14 = vor.u32 %v1746_v3, %v1585_v2  ;;  %v1650_v15 = vor.u32 %v1762_v9, %v1649_v8  ;;  %v1577_v16 = vld [vmem:[%s2534_s1 + $0x250] sm:$0xf]  ;;  %v1744_v17 = vld [vmem:[%s2534_s1 + $0x254] sm:$0xf0]  ;;  %v1590_v18 = vor.u32 %v1745_v10, %v1587_v11 }
  0x45   : > { %v337_v49 = vshll.u32 %v2308_v42, 16  ;;  %v349_v51 = vshll.u32 %v2310_v43, 16  ;;  %v1654_v19 = vor.u32 %v1761_v12, %v1651_v13  ;;  %v1760_v21 = vld [vmem:[%s2534_s1 + $0x2d4] sm:$0xf0]  ;;  %v1743_v22 = vld [vmem:[%s2534_s1 + $0x254] sm:$0xf] }
  0x46   : > { %739 = vmatpush.bf16.msrb.mxu0 %v1386_v20  ;;  %v1641_v20 = vld [vmem:[%s2534_s1 + $0x2d0] sm:$0xf]  ;;  %v1579_v23 = vld [vmem:[%s2534_s1 + $0x258] sm:$0xf0]  ;;  %v1759_v24 = vld [vmem:[%s2534_s1 + $0x2d4] sm:$0xf] }
  0x47   : > { %753 = vmatpush.bf16.msrb.mxu1 %v1450_v25  ;;  %767 = vmatpush.bf16.msrb.mxu2 %v1390_v26  ;;  %v339_v59 = vrot.slane %v337_v49, 1  ;;  %v351_v60 = vrot.slane %v349_v51, 1  ;;  %v1643_v25 = vld [vmem:[%s2534_s1 + $0x2d8] sm:$0xf0]  ;;  %v1578_v26 = vor.u32 %v1744_v17, %v1577_v16  ;;  %v1642_v27 = vor.u32 %v1760_v21, %v1641_v20  ;;  %v1742_v29 = vld [vmem:[%s2534_s1 + $0x244] sm:$0xf0] }
  0x48   : > { %781 = vmatpush.bf16.msrb.mxu3 %v1454_v28  ;;  %v1569_v28 = vld [vmem:[%s2534_s1 + $0x240] sm:$0xf]  ;;  %v1582_v30 = vor.u32 %v1743_v22, %v1579_v23  ;;  %v1646_v31 = vor.u32 %v1759_v24, %v1643_v25  ;;  %v1741_v34 = vld [vmem:[%s2534_s1 + $0x244] sm:$0xf]  ;;  %v1571_v35 = vld [vmem:[%s2534_s1 + $0x248] sm:$0xf0] }
  0x49   : > { %v340_v4 = vsel %vm328_vm2, %v335_v48, %v339_v59  ;;  %v352_v5 = vsel %vm328_vm2, %v347_v50, %v351_v60  ;;  %v1633_v32 = vld [vmem:[%s2534_s1 + $0x2c0] sm:$0xf]  ;;  %v1757_v36 = vld [vmem:[%s2534_s1 + $0x2c4] sm:$0xf]  ;;  %v1635_v37 = vld [vmem:[%s2534_s1 + $0x2c8] sm:$0xf0]  ;;  %v1570_v38 = vor.u32 %v1742_v29, %v1569_v28 }
  0x4a   : > { %740 = vmatpush.bf16.msrb.mxu0 %v1378_v33  ;;  %551 = vmatmul.bf16.vlgmr.msra.gmra.mxu2 %v340_v4  ;;  %v1758_v33 = vld [vmem:[%s2534_s1 + $0x2c4] sm:$0xf0]  ;;  %v1638_v45 = vor.u32 %v1757_v36, %v1635_v37  ;;  %v1625_v46 = vld [vmem:[%s2534_s1 + $0x2b0] sm:$0xf]  ;;  %v1756_v47 = vld [vmem:[%s2534_s1 + $0x2b4] sm:$0xf0] }
  0x4b   : > { %754 = vmatpush.bf16.msrb.mxu1 %v1442_v40  ;;  %768 = vmatpush.bf16.msrb.mxu2 %v1382_v41  ;;  %v1634_v39 = vor.u32 %v1758_v33, %v1633_v32  ;;  %v1561_v40 = vld [vmem:[%s2534_s1 + $0x230] sm:$0xf]  ;;  %v1740_v41 = vld [vmem:[%s2534_s1 + $0x234] sm:$0xf0]  ;;  %v1739_v48 = vld [vmem:[%s2534_s1 + $0x234] sm:$0xf]  ;;  %v1626_v54 = vor.u32 %v1756_v47, %v1625_v46 }
  0x4c   : > { %782 = vmatpush.bf16.msrb.mxu3 %v1446_v44  ;;  %523 = vmatmul.bf16.vlgmr.msra.gmra.mxu0 %v340_v4  ;;  %v1574_v44 = vor.u32 %v1741_v34, %v1571_v35  ;;  %v1563_v49 = vld [vmem:[%s2534_s1 + $0x238] sm:$0xf0]  ;;  %v1755_v50 = vld [vmem:[%s2534_s1 + $0x2b4] sm:$0xf]  ;;  %v1562_v52 = vor.u32 %v1740_v41, %v1561_v40  ;;  %v1553_v55 = vld [vmem:[%s2534_s1 + $0x220] sm:$0xf] }
  0x4d   : > { %537 = vmatmul.bf16.vlgmr.msra.gmra.mxu1 %v352_v5  ;;  %565 = vmatmul.bf16.vlgmr.msra.gmra.mxu3 %v352_v5  ;;  %v1627_v51 = vld [vmem:[%s2534_s1 + $0x2b8] sm:$0xf0]  ;;  %v1738_v56 = vld [vmem:[%s2534_s1 + $0x224] sm:$0xf0]  ;;  %v1617_v57 = vld [vmem:[%s2534_s1 + $0x2a0] sm:$0xf]  ;;  %v1566_v59 = vor.u32 %v1739_v48, %v1563_v49 }
  0x4e   : > { %997 = vmatpush.bf16.msra.mxu0 %v1594_v61  ;;  %v1630_v60 = vor.u32 %v1755_v50, %v1627_v51  ;;  %v1754_v61 = vld [vmem:[%s2534_s1 + $0x2a4] sm:$0xf0]  ;;  %v1555_v3 = vld [vmem:[%s2534_s1 + $0x228] sm:$0xf0]  ;;  %v1753_v4 = vld [vmem:[%s2534_s1 + $0x2a4] sm:$0xf] }
  0x4f   : > { %1011 = vmatpush.bf16.msra.mxu1 %v1658_v0  ;;  %1025 = vmatpush.bf16.msra.mxu2 %v1598_v58  ;;  %v1737_v0 = vld [vmem:[%s2534_s1 + $0x224] sm:$0xf]  ;;  %v789_v2 = vld [vmem:[#allocation2 + $0x8] sm:$0xee]  ;;  %v1554_v58 = vor.u32 %v1738_v56, %v1553_v55  ;;  %v1736_v8 = vld [vmem:[%s2534_s1 + $0x214] sm:$0xf0] }
  0x50   : > { %1039 = vmatpush.bf16.msra.mxu3 %v1662_v7  ;;  %v1619_v5 = vld [vmem:[%s2534_s1 + $0x2a8] sm:$0xf0]  ;;  %v1545_v7 = vld [vmem:[%s2534_s1 + $0x210] sm:$0xf]  ;;  %v824_v9 = vunpack.c.l.b16 %v789_v2  ;;  %v825_v10 = vunpack.c.h.b16 %v789_v2  ;;  %v1558_v11 = vor.u32 %v1737_v0, %v1555_v3  ;;  %v1752_v13 = vld [vmem:[%s2534_s1 + $0x294] sm:$0xf0] }
  0x51   : > { %v1622_v12 = vor.u32 %v1753_v4, %v1619_v5  ;;  %v1751_v16 = vld [vmem:[%s2534_s1 + $0x294] sm:$0xf]  ;;  %v1611_v17 = vld [vmem:[%s2534_s1 + $0x298] sm:$0xf0]  ;;  %v1734_v21 = vld [vmem:[%s2534_s1 + $0x204] sm:$0xf0] }
  0x52   : > { %998 = vmatpush.bf16.msra.mxu0 %v1586_v14  ;;  %v1735_v14 = vld [vmem:[%s2534_s1 + $0x214] sm:$0xf]  ;;  %v1601_v22 = vld [vmem:[%s2534_s1 + $0x280] sm:$0xf]  ;;  %v1750_v23 = vld [vmem:[%s2534_s1 + $0x284] sm:$0xf0]  ;;  %v826_v24 = vpack.c.b16 %v320_v62, %v824_v9  ;;  %v827_v25 = vpack.c.b16 %v321_v1, %v825_v10 }
  0x53   : > { %1012 = vmatpush.bf16.msra.mxu1 %v1650_v15  ;;  %1026 = vmatpush.bf16.msra.mxu2 %v1590_v18  ;;  %v1547_v15 = vld [vmem:[%s2534_s1 + $0x218] sm:$0xf0]  ;;  %v1546_v18 = vor.u32 %v1736_v8, %v1545_v7  ;;  %v1733_v28 = vld [vmem:[%s2534_s1 + $0x204] sm:$0xf]  ;;  %v1539_v29 = vld [vmem:[%s2534_s1 + $0x208] sm:$0xf0]  ;;  %v1602_v1 = vor.u32 %v1750_v23, %v1601_v22 }
  0x54   : > { %1040 = vmatpush.bf16.msra.mxu3 %v1654_v19  ;;  %v1537_v19 = vld [vmem:[%s2534_s1 + $0x200] sm:$0xf]  ;;  %v1603_v53 = vld [vmem:[%s2534_s1 + $0x288] sm:$0xf0]  ;;  %v830_v32 = vrot.slane %v2308_v42, 1  ;;  %v832_v33 = vrot.slane %v827_v25, 1  ;;  %v1542_v35 = vor.u32 %v1733_v28, %v1539_v29 }
  0x55   : > { %v1538_v62 = vor.u32 %v1734_v21, %v1537_v19  ;;  %v833_v34 = vrot.slane %v2310_v43, 1 }
  0x56   : > { %999 = vmatpush.bf16.msra.mxu0 %v1578_v26  ;;  %v1550_v26 = vor.u32 %v1735_v14, %v1547_v15 }
  0x57   : > { %1013 = vmatpush.bf16.msra.mxu1 %v1642_v27  ;;  %1027 = vmatpush.bf16.msra.mxu2 %v1582_v30  ;;  %v1614_v27 = vor.u32 %v1751_v16, %v1611_v17  ;;  %v1749_v30 = vld [vmem:[%s2534_s1 + $0x284] sm:$0xf] }
  0x58   : > { %1041 = vmatpush.bf16.msra.mxu3 %v1646_v31  ;;  %v829_v31 = vrot.slane %v826_v24, 1  ;;  %v1606_v36 = vor.u32 %v1749_v30, %v1603_v53 }
  0x5a   : > { %1000 = vmatpush.bf16.msra.mxu0 %v1570_v38  ;;  %769 = vmatmul.bf16.vlgmr.msrb.gmra.mxu2 %v2250_v6  ;;  %v831_v37 = vsel %vm828_vm5, %v829_v31, %v830_v32  ;;  %v834_v38 = vsel %vm828_vm5, %v832_v33, %v833_v34 }
  0x5b   : > { %1014 = vmatpush.bf16.msra.mxu1 %v1634_v39  ;;  %1028 = vmatpush.bf16.msra.mxu2 %v1574_v44 }
  0x5c   : > { %1042 = vmatpush.bf16.msra.mxu3 %v1638_v45  ;;  %741 = vmatmul.bf16.vlgmr.msrb.gmra.mxu0 %v2250_v6  ;;  %v1618_v6 = vor.u32 %v1754_v61, %v1617_v57 }
  0x5d   : > { %755 = vmatmul.bf16.vlgmr.msrb.gmra.mxu1 %v2254_v63  ;;  %783 = vmatmul.bf16.vlgmr.msrb.gmra.mxu3 %v2254_v63  ;;  %v1609_v63 = vld [vmem:[%s2534_s1 + $0x290] sm:$0xf] }
  0x5e   : > { %1001 = vmatpush.bf16.msra.mxu0 %v1562_v52  ;;  %v1610_v20 = vor.u32 %v1752_v13, %v1609_v63 }
  0x5f   : > { %1015 = vmatpush.bf16.msra.mxu1 %v1626_v54  ;;  %1029 = vmatpush.bf16.msra.mxu2 %v1566_v59 }
  0x60   : > { %1043 = vmatpush.bf16.msra.mxu3 %v1630_v60 }
  0x62   : > { %1002 = vmatpush.bf16.msra.mxu0 %v1554_v58 }
  0x63   : > { %1016 = vmatpush.bf16.msra.mxu1 %v1618_v6  ;;  %1030 = vmatpush.bf16.msra.mxu2 %v1558_v11 }
  0x64   : > { %1044 = vmatpush.bf16.msra.mxu3 %v1622_v12 }
  0x66   : > { %1003 = vmatpush.bf16.msra.mxu0 %v1546_v18 }
  0x67   : > { %1017 = vmatpush.bf16.msra.mxu1 %v1610_v20  ;;  %1031 = vmatpush.bf16.msra.mxu2 %v1550_v26 }
  0x68   : > { %1045 = vmatpush.bf16.msra.mxu3 %v1614_v27 }
  0x6a   : > { %1004 = vmatpush.bf16.msra.mxu0 %v1538_v62 }
  0x6b   : > { %1018 = vmatpush.bf16.msra.mxu1 %v1602_v1  ;;  %1032 = vmatpush.bf16.msra.mxu2 %v1542_v35 }
  0x6c   : > { %1046 = vmatpush.bf16.msra.mxu3 %v1606_v36 }
  0x6d   : > { %1005 = vmatmul.bf16.vlgmr.msra.gmra.mxu0 %v831_v37 }
  0x6e   : > { %1019 = vmatmul.bf16.vlgmr.msra.gmra.mxu1 %v834_v38  ;;  %1033 = vmatmul.bf16.vlgmr.msra.gmra.mxu2 %v831_v37 }
  0x6f   : > { %1047 = vmatmul.bf16.vlgmr.msra.gmra.mxu3 %v834_v38 }
  0xc9   : > { %v524_v39 = vpop.f32.mrf.mxu0 }
  0xca   : > { %v538_v42 = vpop.f32.mrf.mxu1 }
  0xcb   : > { %v539_v54 = vadd.f32 %v538_v42, %v524_v39 }
  0xcd   : > { %v552_v40 = vpop.f32.mrf.mxu2 }
  0xd0   : > { %v566_v41 = vpop.f32.mrf.mxu3 }
  0xd1   : > { %v526_v43 = vpop.f32.mrf.mxu0  ;;  %v567_v57 = vadd.f32 %v566_v41, %v552_v40 }
  0xd2   : > { %v540_v44 = vpop.f32.mrf.mxu1 }
  0xd3   : > { %v541_v61 = vadd.f32 %v540_v44, %v526_v43 }
  0xd5   : > { %v554_v45 = vpop.f32.mrf.mxu2 }
  0xd8   : > { %v568_v46 = vpop.f32.mrf.mxu3 }
  0xd9   : > { %v742_v47 = vpop.f32.mrf.mxu0  ;;  %v569_v13 = vadd.f32 %v568_v46, %v554_v45  ;;  %v1081_v46 = vlaneseq }
  0xda   : > { %v756_v48 = vpop.f32.mrf.mxu1  ;;  %v743_v0 = vadd.f32 %v742_v47, %v539_v54 }
  0xdb   : > { %vm1083_vm6 = vcmp.lt.s32.totalorder %v1081_v46, 256 }
  0xdc   : > { %v757_v5 = vadd.f32 %v756_v48, %v743_v0 }
  0xdd   : > { %v770_v49 = vpop.f32.mrf.mxu2 }
  0xde   : > { %v771_v2 = vadd.f32 %v770_v49, %v567_v57 }
  0xe0   : > { %v784_v50 = vpop.f32.mrf.mxu3 }
  0xe1   : > { %v744_v51 = vpop.f32.mrf.mxu0  ;;  %v785_v7 = vadd.f32 %v784_v50, %v771_v2 }
  0xe2   : > { %v758_v52 = vpop.f32.mrf.mxu1  ;;  %v745_v3 = vadd.f32 %v744_v51, %v541_v61 }
  0xe4   : > { %v759_v11 = vadd.f32 %v758_v52, %v745_v3 }
  0xe5   : > { %v772_v55 = vpop.f32.mrf.mxu2 }
  0xe6   : > { %v773_v16 = vadd.f32 %v772_v55, %v569_v13 }
  0xe8   : > { %v786_v56 = vpop.f32.mrf.mxu3 }
  0xe9   : > { %v787_v25 = vadd.f32 %v786_v56, %v773_v16 }
  0xea   : > { %v1006_v59 = vpop.f32.mrf.mxu0 }
  0xeb   : > { %v1020_v60 = vpop.f32.mrf.mxu1 }
  0xec   : > { %v1021_v4 = vadd.f32 %v1020_v60, %v1006_v59 }
  0xee   : > { %v1053_v12 = vadd.f32 %v1021_v4, %v757_v5 }
  0xf0   : > { %v1086_v18 = vmul.f32 %v1053_v12, %v1053_v12 }
  0xf1   : > { %v1034_v58 = vpop.f32.mrf.mxu2 }
  0xf2   : > { %v1048_v6 = vpop.f32.mrf.mxu3  ;;  %v1008_v9 = vpop.f32.mrf.mxu0 }
  0xf3   : > { %v1049_v8 = vadd.f32 %v1048_v6, %v1034_v58  ;;  %v1022_v10 = vpop.f32.mrf.mxu1 }
  0xf4   : > { %v1023_v63 = vadd.f32 %v1022_v10, %v1008_v9 }
  0xf5   : > { %v1054_v14 = vadd.f32 %v1049_v8, %v785_v7 }
  0xf6   : > { %v1055_v15 = vadd.f32 %v1023_v63, %v759_v11 }
  0xf7   : > { %v1057_v17 = vpack.c.bf16 %v1054_v14, %v1053_v12  ;;  %v1087_v30 = vmul.f32 %v1054_v14, %v1054_v14 }
  0xf8   : > { %v1061_v19 = vadd.f32 %v1055_v15, %v1053_v12  ;;  %v1088_v20 = vmul.f32 %v1055_v15, %v1055_v15 }
  0xf9   : > { %1059 = vst [vmem:[%s185_s23] sm:$0xff] %v1057_v17  ;;  %v1036_v23 = vpop.f32.mrf.mxu2 }
  0xfa   : > { %v1062_v21 = vrot.slane %v1061_v19, 4  ;;  %v1090_v22 = vadd.f32 %v1088_v20, %v1086_v18  ;;  %v1050_v24 = vpop.f32.mrf.mxu3 }
  0xfb   : > { %v1051_v26 = vadd.f32 %v1050_v24, %v1036_v23 }
  0xfc   : > { %v1091_v27 = vrot.slane %v1090_v22, 4  ;;  %v1063_v28 = vadd.f32 %v1062_v21, %v1061_v19 }
  0xfd   : > { %v1056_v29 = vadd.f32 %v1051_v26, %v787_v25 }
  0xfe   : > { %v1092_v53 = vadd.f32 %v1091_v27, %v1090_v22  ;;  %v1064_v32 = vrot.slane %v1063_v28, 2 }
  0xff   : > { %v1058_v62 = vpack.c.bf16 %v1056_v29, %v1055_v15  ;;  %v1068_v1 = vadd.f32 %v1056_v29, %v1054_v14  ;;  %v1089_v31 = vmul.f32 %v1056_v29, %v1056_v29 }
 0x100   : > { %v1093_v35 = vrot.slane %v1092_v53, 2  ;;  %v1065_v38 = vadd.f32 %v1064_v32, %v1063_v28 }
 0x101   : > { %1060 = vst [vmem:[%s185_s23 + $0x8] sm:$0xff] %v1058_v62  ;;  %v1069_v33 = vrot.slane %v1068_v1, 4  ;;  %v1097_v34 = vadd.f32 %v1089_v31, %v1087_v30 }
 0x102   : > { %v1094_v40 = vadd.f32 %v1093_v35, %v1092_v53  ;;  %v1066_v44 = vrot.slane %v1065_v38, 1 }
 0x103   : > { %v1070_v36 = vadd.f32 %v1069_v33, %v1068_v1  ;;  %v1098_v37 = vrot.slane %v1097_v34, 4 }
 0x104   : > { %v1095_v48 = vrot.slane %v1094_v40, 1  ;;  %v1067_v51 = vadd.f32 %v1066_v44, %v1065_v38 }
 0x105   : > { %v1071_v39 = vrot.slane %v1070_v36, 2  ;;  %v1099_v42 = vadd.f32 %v1098_v37, %v1097_v34 }
 0x106   : > { %v1096_v55 = vadd.f32 %v1095_v48, %v1094_v40 }
 0x107   : > { %v1072_v41 = vadd.f32 %v1071_v39, %v1070_v36  ;;  %v1100_v43 = vrot.slane %v1099_v42, 2 }
 0x109   : > { %v1073_v45 = vrot.slane %v1072_v41, 1  ;;  %v1101_v47 = vadd.f32 %v1100_v43, %v1099_v42 }
 0x10b   : > { %v1074_v49 = vadd.f32 %v1073_v45, %v1072_v41  ;;  %v1102_v50 = vrot.slane %v1101_v47, 1 }
 0x10d   : > { %v1077_v52 = vrot.slane %v1074_v49, 7  ;;  %v1103_v54 = vadd.f32 %v1102_v50, %v1101_v47 }
 0x10f   : > { %v1079_v56 = vsel %vm195_vm0, %v1067_v51, %v1077_v52  ;;  %v1106_v57 = vrot.slane %v1103_v54, 7 }
 0x110   : > { %1085 = vst.msk [vmem:[%s191_s25] ss:$2 sm:$0x3] %vm1083_vm6, %v1079_v56 }
 0x111   : > { %v1107_v59 = vsel %vm195_vm0, %v1096_v55, %v1106_v57 }
 0x112   : > { %1663 = vst.msk [vmem:[%s191_s25 + $0x1] ss:$2 sm:$0x3] %vm1083_vm6, %v1107_v59 }
 0x113 PF: > { %s14_s12 = sadd.s32 1, %s1779_s12  }
 0x114   : > { %p11_p5 = scmp.ge.s32.totalorder %s14_s12, 4  }
 0x116   :  { %13 = sbr.rel (!%p11_p5) target bundleno = 1 (0x1), region = 73 }

// kernel: basic_block_forward.4
= control target key start
LH: loop header
LB: loop body
LE: loop exit
PB: predicated region body
PF: predicated region fallthrough
CT: control target
= control target key end

     0   :  { %s1895_s18 = smov 0   ;;  %s2646_s0 = inlined_call_operand.vmem [shape: bf16[32,256], index: 0, kind: input, shape index: {}]   ;;  %s2647_s1 = inlined_call_operand.vmem [shape: f32[1,256], index: 1, kind: input, shape index: {}]   ;;  %s2648_s2 = inlined_call_operand.vmem [shape: f32[1,256], index: 2, kind: input, shape index: {}]   ;;  %s2649_s3 = inlined_call_operand.vmem [shape: bf16[3,256,256], index: 3, kind: input, shape index: {}]   ;;  %s2650_s4 = inlined_call_operand.vmem [shape: bf16[32,256], index: 4, kind: output, shape index: {0}]   ;;  %s2651_s5 = inlined_call_operand.vmem [shape: f32[2,2,256], index: 5, kind: output, shape index: {1}]  }
   0x1 LB: > { %s1901_s19 = sadd.s32 4294967295, %s1863_s18   ;;  %p1290_p0 = scmp.ge.s32.totalorder %s1863_s18, 1  ;;  %s1863_s18 = sphi %s1895_s18, %s16_s18  }
   0x2   : > { %p192_p1 = scmp.lt.s32.totalorder %s1863_s18, 3 }
   0x4   : > { %p193_p2 = pnand %p1290_p0, %p192_p1 }
   0x5   : > { %s1291_s23 = sshll.u32 (!%p193_p2), %s1901_s19, 1  ;;  %p241_p4 = scmp.lt.s32.totalorder (!%p193_p2), %s1901_s19, 1 }
   0x6   : > { %196 = sbr.rel (%p193_p2) target bundleno = 280 (0x118), region = 36  ;;  %p2174_p3 = scmp.lt.s32.totalorder (!%p193_p2), %s1291_s23, 3 }
   0xb   : > { %v1389_v0 = vld [vmem:[%s2649_s3 + $0x170] sm:$0xf]  ;;  %v1800_v1 = vld [vmem:[%s2649_s3 + $0x174] sm:$0xf0]  ;;  %v1799_v5 = vld [vmem:[%s2649_s3 + $0x174] sm:$0xf] }
   0xc   : > { %v1453_v2 = vld [vmem:[%s2649_s3 + $0x1f0] sm:$0xf]  ;;  %v1390_v3 = vor.u32 %v1800_v1, %v1389_v0  ;;  %v1816_v4 = vld [vmem:[%s2649_s3 + $0x1f4] sm:$0xf0]  ;;  %v1391_v6 = vld [vmem:[%s2649_s3 + $0x178] sm:$0xf0] }
   0xd   : > { %v1454_v7 = vor.u32 %v1816_v4, %v1453_v2  ;;  %v1394_v8 = vor.u32 %v1799_v5, %v1391_v6  ;;  %v1815_v9 = vld [vmem:[%s2649_s3 + $0x1f4] sm:$0xf]  ;;  %v1455_v10 = vld [vmem:[%s2649_s3 + $0x1f8] sm:$0xf0]  ;;  %v1381_v11 = vld [vmem:[%s2649_s3 + $0x160] sm:$0xf] }
   0xe   : > { %599 = vmatpush.bf16.msra.mxu0 %v1390_v3  ;;  %v1458_v12 = vor.u32 %v1815_v9, %v1455_v10  ;;  %v1798_v13 = vld [vmem:[%s2649_s3 + $0x164] sm:$0xf0]  ;;  %v1445_v14 = vld [vmem:[%s2649_s3 + $0x1e0] sm:$0xf]  ;;  %v1797_v18 = vld [vmem:[%s2649_s3 + $0x164] sm:$0xf] }
   0xf   : > { %v1814_v15 = vld [vmem:[%s2649_s3 + $0x1e4] sm:$0xf0]  ;;  %613 = vmatpush.bf16.msra.mxu1 %v1454_v7  ;;  %627 = vmatpush.bf16.msra.mxu2 %v1394_v8  ;;  %v1382_v16 = vor.u32 %v1798_v13, %v1381_v11  ;;  %v1383_v19 = vld [vmem:[%s2649_s3 + $0x168] sm:$0xf0]  ;;  %v1813_v20 = vld [vmem:[%s2649_s3 + $0x1e4] sm:$0xf] }
  0x10   : > { %v1446_v17 = vor.u32 %v1814_v15, %v1445_v14  ;;  %641 = vmatpush.bf16.msra.mxu3 %v1458_v12  ;;  %v1386_v21 = vor.u32 %v1797_v18, %v1383_v19  ;;  %v1447_v22 = vld [vmem:[%s2649_s3 + $0x1e8] sm:$0xf0]  ;;  %v1373_v23 = vld [vmem:[%s2649_s3 + $0x150] sm:$0xf]  ;;  %v1796_v24 = vld [vmem:[%s2649_s3 + $0x154] sm:$0xf0] }
  0x11   : > { %v1450_v25 = vor.u32 %v1813_v20, %v1447_v22  ;;  %v1437_v26 = vld [vmem:[%s2649_s3 + $0x1d0] sm:$0xf]  ;;  %v1812_v27 = vld [vmem:[%s2649_s3 + $0x1d4] sm:$0xf0]  ;;  %v1795_v28 = vld [vmem:[%s2649_s3 + $0x154] sm:$0xf]  ;;  %v1374_v29 = vor.u32 %v1796_v24, %v1373_v23 }
  0x12   : > { %600 = vmatpush.bf16.msra.mxu0 %v1382_v16  ;;  %v1375_v30 = vld [vmem:[%s2649_s3 + $0x158] sm:$0xf0]  ;;  %v1811_v31 = vld [vmem:[%s2649_s3 + $0x1d4] sm:$0xf]  ;;  %v1438_v33 = vor.u32 %v1812_v27, %v1437_v26  ;;  %v1365_v35 = vld [vmem:[%s2649_s3 + $0x140] sm:$0xf] }
  0x13   : > { %v1439_v32 = vld [vmem:[%s2649_s3 + $0x1d8] sm:$0xf0]  ;;  %614 = vmatpush.bf16.msra.mxu1 %v1446_v17  ;;  %628 = vmatpush.bf16.msra.mxu2 %v1386_v21  ;;  %v1378_v34 = vor.u32 %v1795_v28, %v1375_v30  ;;  %v1794_v36 = vld [vmem:[%s2649_s3 + $0x144] sm:$0xf0]  ;;  %v1429_v37 = vld [vmem:[%s2649_s3 + $0x1c0] sm:$0xf] }
  0x14   : > { %642 = vmatpush.bf16.msra.mxu3 %v1450_v25  ;;  %v1442_v38 = vor.u32 %v1811_v31, %v1439_v32  ;;  %v1810_v39 = vld [vmem:[%s2649_s3 + $0x1c4] sm:$0xf0]  ;;  %v1793_v40 = vld [vmem:[%s2649_s3 + $0x144] sm:$0xf]  ;;  %v1367_v41 = vld [vmem:[%s2649_s3 + $0x148] sm:$0xf0]  ;;  %v1366_v44 = vor.u32 %v1794_v36, %v1365_v35 }
  0x15   : > { %v1809_v42 = vld [vmem:[%s2649_s3 + $0x1c4] sm:$0xf]  ;;  %v1431_v43 = vld [vmem:[%s2649_s3 + $0x1c8] sm:$0xf0]  ;;  %v1430_v45 = vor.u32 %v1810_v39, %v1429_v37  ;;  %v1370_v46 = vor.u32 %v1793_v40, %v1367_v41  ;;  %v1357_v47 = vld [vmem:[%s2649_s3 + $0x130] sm:$0xf] }
  0x16   : > { %601 = vmatpush.bf16.msra.mxu0 %v1374_v29  ;;  %v1792_v48 = vld [vmem:[%s2649_s3 + $0x134] sm:$0xf0]  ;;  %v1421_v49 = vld [vmem:[%s2649_s3 + $0x1b0] sm:$0xf]  ;;  %v1434_v50 = vor.u32 %v1809_v42, %v1431_v43  ;;  %v1791_v52 = vld [vmem:[%s2649_s3 + $0x134] sm:$0xf] }
  0x17   : > { %615 = vmatpush.bf16.msra.mxu1 %v1438_v33  ;;  %629 = vmatpush.bf16.msra.mxu2 %v1378_v34  ;;  %v1808_v51 = vld [vmem:[%s2649_s3 + $0x1b4] sm:$0xf0]  ;;  %v1359_v53 = vld [vmem:[%s2649_s3 + $0x138] sm:$0xf0]  ;;  %v1807_v54 = vld [vmem:[%s2649_s3 + $0x1b4] sm:$0xf]  ;;  %v1358_v56 = vor.u32 %v1792_v48, %v1357_v47 }
  0x18   : > { %643 = vmatpush.bf16.msra.mxu3 %v1442_v38  ;;  %v1423_v55 = vld [vmem:[%s2649_s3 + $0x1b8] sm:$0xf0]  ;;  %v1422_v57 = vor.u32 %v1808_v51, %v1421_v49  ;;  %v1362_v58 = vor.u32 %v1791_v52, %v1359_v53  ;;  %v1349_v59 = vld [vmem:[%s2649_s3 + $0x120] sm:$0xf]  ;;  %v1790_v60 = vld [vmem:[%s2649_s3 + $0x124] sm:$0xf0] }
  0x19   : > { %v1413_v61 = vld [vmem:[%s2649_s3 + $0x1a0] sm:$0xf]  ;;  %v1426_v62 = vor.u32 %v1807_v54, %v1423_v55  ;;  %v1806_v63 = vld [vmem:[%s2649_s3 + $0x1a4] sm:$0xf0]  ;;  %v1789_v0 = vld [vmem:[%s2649_s3 + $0x124] sm:$0xf]  ;;  %v1350_v4 = vor.u32 %v1790_v60, %v1349_v59 }
  0x1a   : > { %602 = vmatpush.bf16.msra.mxu0 %v1366_v44  ;;  %v1351_v1 = vld [vmem:[%s2649_s3 + $0x128] sm:$0xf0]  ;;  %v1805_v2 = vld [vmem:[%s2649_s3 + $0x1a4] sm:$0xf]  ;;  %v1414_v5 = vor.u32 %v1806_v63, %v1413_v61  ;;  %v1341_v7 = vld [vmem:[%s2649_s3 + $0x110] sm:$0xf] }
  0x1b   : > { %616 = vmatpush.bf16.msra.mxu1 %v1430_v45  ;;  %630 = vmatpush.bf16.msra.mxu2 %v1370_v46  ;;  %v1415_v3 = vld [vmem:[%s2649_s3 + $0x1a8] sm:$0xf0]  ;;  %v1354_v6 = vor.u32 %v1789_v0, %v1351_v1  ;;  %v1788_v8 = vld [vmem:[%s2649_s3 + $0x114] sm:$0xf0]  ;;  %v1405_v9 = vld [vmem:[%s2649_s3 + $0x190] sm:$0xf] }
  0x1c   : > { %644 = vmatpush.bf16.msra.mxu3 %v1434_v50  ;;  %v1418_v10 = vor.u32 %v1805_v2, %v1415_v3  ;;  %v1804_v11 = vld [vmem:[%s2649_s3 + $0x194] sm:$0xf0]  ;;  %v1787_v12 = vld [vmem:[%s2649_s3 + $0x114] sm:$0xf]  ;;  %v1343_v13 = vld [vmem:[%s2649_s3 + $0x118] sm:$0xf0]  ;;  %v1342_v16 = vor.u32 %v1788_v8, %v1341_v7 }
  0x1d   : > { %v1803_v14 = vld [vmem:[%s2649_s3 + $0x194] sm:$0xf]  ;;  %v1407_v15 = vld [vmem:[%s2649_s3 + $0x198] sm:$0xf0]  ;;  %v1333_v17 = vld [vmem:[%s2649_s3 + $0x100] sm:$0xf]  ;;  %v1406_v19 = vor.u32 %v1804_v11, %v1405_v9  ;;  %v1346_v20 = vor.u32 %v1787_v12, %v1343_v13 }
  0x1e   : > { %603 = vmatpush.bf16.msra.mxu0 %v1358_v56  ;;  %v1786_v18 = vld [vmem:[%s2649_s3 + $0x104] sm:$0xf0]  ;;  %v1397_v21 = vld [vmem:[%s2649_s3 + $0x180] sm:$0xf]  ;;  %v1785_v23 = vld [vmem:[%s2649_s3 + $0x104] sm:$0xf]  ;;  %v1410_v24 = vor.u32 %v1803_v14, %v1407_v15 }
  0x1f   : > { %617 = vmatpush.bf16.msra.mxu1 %v1422_v57  ;;  %631 = vmatpush.bf16.msra.mxu2 %v1362_v58  ;;  %v1802_v22 = vld [vmem:[%s2649_s3 + $0x184] sm:$0xf0]  ;;  %v1335_v25 = vld [vmem:[%s2649_s3 + $0x108] sm:$0xf0]  ;;  %v1801_v26 = vld [vmem:[%s2649_s3 + $0x184] sm:$0xf]  ;;  %v1334_v31 = vor.u32 %v1786_v18, %v1333_v17 }
  0x20   : > { %645 = vmatpush.bf16.msra.mxu3 %v1426_v62  ;;  %v1399_v27 = vld [vmem:[%s2649_s3 + $0x188] sm:$0xf0]  ;;  %v1517_v28 = vld [vmem:[%s2649_s3 + $0x70] sm:$0xf]  ;;  %v1768_v29 = vld [vmem:[%s2649_s3 + $0x74] sm:$0xf0]  ;;  %v1398_v35 = vor.u32 %v1802_v22, %v1397_v21  ;;  %v1338_v36 = vor.u32 %v1785_v23, %v1335_v25 }
  0x21   : > { %v1581_v30 = vld [vmem:[%s2649_s3 + $0xf0] sm:$0xf]  ;;  %v1784_v32 = vld [vmem:[%s2649_s3 + $0xf4] sm:$0xf0]  ;;  %v1767_v33 = vld [vmem:[%s2649_s3 + $0x74] sm:$0xf]  ;;  %v1402_v39 = vor.u32 %v1801_v26, %v1399_v27  ;;  %v1518_v40 = vor.u32 %v1768_v29, %v1517_v28 }
  0x22   : > { %604 = vmatpush.bf16.msra.mxu0 %v1350_v4  ;;  %v1519_v34 = vld [vmem:[%s2649_s3 + $0x78] sm:$0xf0]  ;;  %v1783_v37 = vld [vmem:[%s2649_s3 + $0xf4] sm:$0xf]  ;;  %v1509_v41 = vld [vmem:[%s2649_s3 + $0x60] sm:$0xf]  ;;  %v1582_v43 = vor.u32 %v1784_v32, %v1581_v30 }
  0x23   : > { %618 = vmatpush.bf16.msra.mxu1 %v1414_v5  ;;  %632 = vmatpush.bf16.msra.mxu2 %v1354_v6  ;;  %v1583_v38 = vld [vmem:[%s2649_s3 + $0xf8] sm:$0xf0]  ;;  %v1766_v42 = vld [vmem:[%s2649_s3 + $0x64] sm:$0xf0]  ;;  %v1522_v44 = vor.u32 %v1767_v33, %v1519_v34  ;;  %v1573_v45 = vld [vmem:[%s2649_s3 + $0xe0] sm:$0xf] }
  0x24   : > { %646 = vmatpush.bf16.msra.mxu3 %v1418_v10  ;;  %v1782_v46 = vld [vmem:[%s2649_s3 + $0xe4] sm:$0xf0]  ;;  %v1765_v47 = vld [vmem:[%s2649_s3 + $0x64] sm:$0xf]  ;;  %v1586_v48 = vor.u32 %v1783_v37, %v1583_v38  ;;  %v1511_v49 = vld [vmem:[%s2649_s3 + $0x68] sm:$0xf0]  ;;  %v1510_v54 = vor.u32 %v1766_v42, %v1509_v41 }
  0x25   : > { %v1781_v50 = vld [vmem:[%s2649_s3 + $0xe4] sm:$0xf]  ;;  %v1575_v51 = vld [vmem:[%s2649_s3 + $0xe8] sm:$0xf0]  ;;  %v2148_v52 = vld [vmem:[%s2649_s3 + $0x50] sm:$0xf]  ;;  %v1574_v55 = vor.u32 %v1782_v46, %v1573_v45  ;;  %v1514_v61 = vor.u32 %v1765_v47, %v1511_v49 }
  0x26   : > { %605 = vmatpush.bf16.msra.mxu0 %v1342_v16  ;;  %v2153_v53 = vld [vmem:[%s2649_s3 + $0x54] sm:$0xf0]  ;;  %v2159_v56 = vld [vmem:[%s2649_s3 + $0xd0] sm:$0xf]  ;;  %v2169_v58 = vld [vmem:[%s2649_s3 + $0x54] sm:$0xf]  ;;  %v1578_v2 = vor.u32 %v1781_v50, %v1575_v51 }
  0x27   : > { %619 = vmatpush.bf16.msra.mxu1 %v1406_v19  ;;  %633 = vmatpush.bf16.msra.mxu2 %v1346_v20  ;;  %v2164_v57 = vld [vmem:[%s2649_s3 + $0xd4] sm:$0xf0]  ;;  %v1503_v59 = vld [vmem:[%s2649_s3 + $0x58] sm:$0xf0]  ;;  %v2181_v60 = vld [vmem:[%s2647_s1] sm:$0x3]  ;;  %v1502_v8 = vor.u32 %v2153_v53, %v2148_v52 }
  0x28   : > { %647 = vmatpush.bf16.msra.mxu3 %v1410_v24  ;;  %v2186_v62 = vld [vmem:[%s2649_s3 + $0xd4] sm:$0xf]  ;;  %v1567_v63 = vld [vmem:[%s2649_s3 + $0xd8] sm:$0xf0]  ;;  %v2194_v0 = vld [vmem:[%s2649_s3 + $0x40] sm:$0xf]  ;;  %v1566_v11 = vor.u32 %v2164_v57, %v2159_v56  ;;  %v1506_v12 = vor.u32 %v2169_v58, %v1503_v59 }
  0x29   : > { %v2199_v1 = vld [vmem:[%s2649_s3 + $0x44] sm:$0xf0]  ;;  %vm277_vm0 = vcmask 1040384   ;;  %vm278_vm1 = vsmask.f32 256  ;;  %s2666_s23 = smov (!%p2174_p3, %s1291_s23), 3  ;;  %v1570_v18 = vor.u32 %v2186_v62, %v1567_v63 }
  0x2a   : > { %606 = vmatpush.bf16.msra.mxu0 %v1334_v31  ;;  %vm281_vm2 = vsmask.f32 4352  ;;  %vm2207_vm3 = vmand %vm277_vm0, %vm278_vm1  ;;  %vm280_vm4 = vcmask 1044484   ;;  %v284_v4 = vld [vmem:[#allocation2 + $0x8] sm:$0x11]  ;;  %s1750_s29 = sshll.u32 %s2666_s23, 3  ;;  %v1494_v19 = vor.u32 %v2199_v1, %v2194_v0 }
  0x2b   : > { %620 = vmatpush.bf16.msra.mxu1 %v1398_v35  ;;  %634 = vmatpush.bf16.msra.mxu2 %v1338_v36  ;;  %vm287_vm5 = vsmask.f32 7938  ;;  %v2214_v5 = vld [vmem:[%s2649_s3 + $0xc0] sm:$0xf]  ;;  %vm2220_vm6 = vmand %vm280_vm4, %vm281_vm2  ;;  %vm289_vm7 = vsmask.f32 7954  ;;  %s232_s9 = scalar_lea.vmem %s2646_s0, %s1750_s29  ;;  %s239_s21 = scalar_lea.vmem %s2650_s4, %s1750_s29 }
  0x2c   : > { %648 = vmatpush.bf16.msra.mxu3 %v1402_v39  ;;  %v263_v6 = vld [vmem:[%s2648_s2] sm:$0x3]  ;;  %v1778_v9 = vld [vmem:[%s2649_s3 + $0xc4] sm:$0xf0]  ;;  %v1761_v10 = vld [vmem:[%s2649_s3 + $0x44] sm:$0xf] }
  0x2d   : > { %vm283_vm8 = vmor %vm2220_vm6, %vm2207_vm3  ;;  %v1495_v13 = vld [vmem:[%s2649_s3 + $0x48] sm:$0xf0]  ;;  %v255_v14 = vperm.slane %v2181_v60, 0  ;;  %v292_v17 = vld [vmem:[#allocation2] sm:$0x11]  ;;  %v256_v22 = vperm.slane %v2181_v60, 1  ;;  %v1558_v30 = vor.u32 %v1778_v9, %v2214_v5 }
  0x2e   : > { %817 = vmatpush.bf16.msrb.mxu0 %v1518_v40  ;;  %v285_v15 = vsel %vm283_vm8, 0, %v284_v4  ;;  %vm2256_vm9 = vmand %vm277_vm0, %vm287_vm5  ;;  %v247_v20 = vld [vmem:[%s232_s9] sm:$0xff]  ;;  %v248_v21 = vld [vmem:[%s232_s9 + $0x8] sm:$0xff]  ;;  %v265_v23 = vperm.slane %v263_v6, 0  ;;  %v1498_v31 = vor.u32 %v1761_v10, %v1495_v13  ;;  %v266_v32 = vperm.slane %v263_v6, 1  ;;  %s2668_s19 = smov (!%p241_p4, %s1901_s19), 1 }
  0x2f   : > { %831 = vmatpush.bf16.msrb.mxu1 %v1582_v43  ;;  %845 = vmatpush.bf16.msrb.mxu2 %v1522_v44  ;;  %286 = vst [vmem:[#allocation2 + $0x8] sm:$0x11] %v285_v15  ;;  %vm290_vm10 = vmand %vm280_vm4, %vm289_vm7  ;;  %v1777_v24 = vld [vmem:[%s2649_s3 + $0xc4] sm:$0xf]  ;;  %v1559_v25 = vld [vmem:[%s2649_s3 + $0xc8] sm:$0xf0]  ;;  %v249_v26 = vunpack.c.l.bf16 %v247_v20  ;;  %v250_v27 = vunpack.c.h.bf16 %v247_v20  ;;  %v251_v28 = vunpack.c.l.bf16 %v248_v21  ;;  %v252_v29 = vunpack.c.h.bf16 %v248_v21 }
  0x30   : > { %859 = vmatpush.bf16.msrb.mxu3 %v1586_v48  ;;  %vm291_vm11 = vmor %vm290_vm10, %vm2256_vm9  ;;  %v1485_v37 = vld [vmem:[%s2649_s3 + $0x30] sm:$0xf]  ;;  %v1760_v38 = vld [vmem:[%s2649_s3 + $0x34] sm:$0xf0]  ;;  %v1562_v39 = vor.u32 %v1777_v24, %v1559_v25  ;;  %vm319_vm12 = vcmask 1043456   ;;  %vm321_vm13 = vcmask 1047556  }
  0x31   : > { %v293_v33 = vsel %vm291_vm11, 0, %v292_v17  ;;  %v259_v34 = vmul.f32 %v255_v14, %v249_v26  ;;  %v260_v35 = vmul.f32 %v256_v22, %v250_v27  ;;  %v261_v36 = vmul.f32 %v255_v14, %v251_v28  ;;  %v1549_v41 = vld [vmem:[%s2649_s3 + $0xb0] sm:$0xf]  ;;  %v1776_v42 = vld [vmem:[%s2649_s3 + $0xb4] sm:$0xf0]  ;;  %vm2307_vm14 = vmand %vm319_vm12, %vm287_vm5  ;;  %s1752_s23 = sshll.u32 %s2668_s19, 2 }
  0x32   : > { %818 = vmatpush.bf16.msrb.mxu0 %v1510_v54  ;;  %294 = vst [vmem:[#allocation2] sm:$0x11] %v293_v33  ;;  %v262_v40 = vmul.f32 %v256_v22, %v252_v29  ;;  %v1759_v46 = vld [vmem:[%s2649_s3 + $0x34] sm:$0xf]  ;;  %v1487_v47 = vld [vmem:[%s2649_s3 + $0x38] sm:$0xf0]  ;;  %v1486_v49 = vor.u32 %v1760_v38, %v1485_v37  ;;  %v1550_v50 = vor.u32 %v1776_v42, %v1549_v41  ;;  %vm2328_vm2 = vmand %vm321_vm13, %vm289_vm7  ;;  %s245_s24 = scalar_lea.vmem %s2651_s5, %s1752_s23 }
  0x33   : > { %832 = vmatpush.bf16.msrb.mxu1 %v1574_v55  ;;  %846 = vmatpush.bf16.msrb.mxu2 %v1514_v61  ;;  %v269_v43 = vadd.f32 %v265_v23, %v259_v34  ;;  %v270_v44 = vadd.f32 %v266_v32, %v260_v35  ;;  %v271_v45 = vadd.f32 %v265_v23, %v261_v36  ;;  %v1775_v51 = vld [vmem:[%s2649_s3 + $0xb4] sm:$0xf]  ;;  %v1551_v52 = vld [vmem:[%s2649_s3 + $0xb8] sm:$0xf0]  ;;  %v1477_v53 = vld [vmem:[%s2649_s3 + $0x20] sm:$0xf] }
  0x34   : > { %860 = vmatpush.bf16.msrb.mxu3 %v1578_v2  ;;  %v272_v48 = vadd.f32 %v266_v32, %v262_v40  ;;  %v1490_v57 = vor.u32 %v1759_v46, %v1487_v47  ;;  %v1758_v58 = vld [vmem:[%s2649_s3 + $0x24] sm:$0xf0]  ;;  %v1554_v61 = vor.u32 %v1775_v51, %v1551_v52  ;;  %v1541_v62 = vld [vmem:[%s2649_s3 + $0xa0] sm:$0xf]  ;;  %v1757_v1 = vld [vmem:[%s2649_s3 + $0x24] sm:$0xf] }
  0x35   : > { %v273_v54 = vmax.f32 %v269_v43, 0.0  ;;  %v274_v55 = vmax.f32 %v270_v44, 0.0  ;;  %v275_v56 = vmax.f32 %v271_v45, 0.0  ;;  %v1774_v63 = vld [vmem:[%s2649_s3 + $0xa4] sm:$0xf0]  ;;  %vm323_vm4 = vmor %vm2328_vm2, %vm2307_vm14  ;;  %vm912_vm3 = vcmask 1046528  }
  0x36   : > { %819 = vmatpush.bf16.msrb.mxu0 %v1502_v8  ;;  %v276_v59 = vmax.f32 %v272_v48, 0.0  ;;  %v1479_v2 = vld [vmem:[%s2649_s3 + $0x28] sm:$0xf0]  ;;  %v1773_v4 = vld [vmem:[%s2649_s3 + $0xa4] sm:$0xf]  ;;  %v1478_v8 = vor.u32 %v1758_v58, %v1477_v53  ;;  %v1542_v13 = vor.u32 %v1774_v63, %v1541_v62 }
  0x37   : > { %833 = vmatpush.bf16.msrb.mxu1 %v1566_v11  ;;  %847 = vmatpush.bf16.msrb.mxu2 %v1506_v12  ;;  %v295_v0 = vpack.c.bf16 %v274_v55, %v273_v54  ;;  %vm297_vm15 = vsmask.f32 4368  ;;  %v1543_v9 = vld [vmem:[%s2649_s3 + $0xa8] sm:$0xf0]  ;;  %v1469_v10 = vld [vmem:[%s2649_s3 + $0x10] sm:$0xf]  ;;  %v1482_v14 = vor.u32 %v1757_v1, %v1479_v2 }
  0x38   : > { %861 = vmatpush.bf16.msrb.mxu3 %v1570_v18  ;;  %v296_v5 = vpack.c.bf16 %v276_v59, %v275_v56  ;;  %v1756_v15 = vld [vmem:[%s2649_s3 + $0x14] sm:$0xf0]  ;;  %v1533_v16 = vld [vmem:[%s2649_s3 + $0x90] sm:$0xf]  ;;  %v1755_v21 = vld [vmem:[%s2649_s3 + $0x14] sm:$0xf] }
  0x39   : > { %v300_v11 = vshrl.u32 %v295_v0, 16  ;;  %v303_v12 = vshll.u32 %v295_v0, 16  ;;  %v1772_v20 = vld [vmem:[%s2649_s3 + $0x94] sm:$0xf0]  ;;  %v328_v23 = vld [vmem:[#allocation2] sm:$0x11]  ;;  %v1470_v28 = vor.u32 %v1756_v15, %v1469_v10  ;;  %vm2368_vm5 = vmor %vm278_vm1, %vm297_vm15 }
  0x3a   : > { %820 = vmatpush.bf16.msrb.mxu0 %v1494_v19  ;;  %v308_v17 = vshrl.u32 %v296_v5, 16  ;;  %v311_v18 = vshll.u32 %v296_v5, 16  ;;  %v1546_v19 = vor.u32 %v1773_v4, %v1543_v9  ;;  %v1471_v24 = vld [vmem:[%s2649_s3 + $0x18] sm:$0xf0]  ;;  %v1771_v25 = vld [vmem:[%s2649_s3 + $0x94] sm:$0xf]  ;;  %v1534_v34 = vor.u32 %v1772_v20, %v1533_v16 }
  0x3b   : > { %834 = vmatpush.bf16.msrb.mxu1 %v1558_v30  ;;  %848 = vmatpush.bf16.msrb.mxu2 %v1498_v31  ;;  %v302_v22 = vrot.slane %v300_v11, 7  ;;  %v324_v27 = vld [vmem:[#allocation2 + $0x8] sm:$0xff]  ;;  %v1535_v29 = vld [vmem:[%s2649_s3 + $0x98] sm:$0xf0]  ;;  %v1461_v30 = vld [vmem:[%s2649_s3] sm:$0xf]  ;;  %v1474_v35 = vor.u32 %v1755_v21, %v1471_v24 }
  0x3c   : > { %862 = vmatpush.bf16.msrb.mxu3 %v1562_v39  ;;  %v310_v26 = vrot.slane %v308_v17, 7  ;;  %v1754_v36 = vld [vmem:[%s2649_s3 + $0x4] sm:$0xf0]  ;;  %v1525_v37 = vld [vmem:[%s2649_s3 + $0x80] sm:$0xf]  ;;  %v1538_v40 = vor.u32 %v1771_v25, %v1535_v29 }
  0x3d   : > { %v305_v32 = vor.u32 %v303_v12, %v302_v22  ;;  %v306_v33 = vrot.slane %v302_v22, 4  ;;  %v1770_v41 = vld [vmem:[%s2649_s3 + $0x84] sm:$0xf0]  ;;  %v1753_v42 = vld [vmem:[%s2649_s3 + $0x4] sm:$0xf]  ;;  %v1462_v44 = vor.u32 %v1754_v36, %v1461_v30 }
  0x3e   : > { %821 = vmatpush.bf16.msrb.mxu0 %v1486_v49  ;;  %v313_v38 = vor.u32 %v311_v18, %v310_v26  ;;  %v315_v39 = vrot.slane %v310_v26, 4  ;;  %v1463_v45 = vld [vmem:[%s2649_s3 + $0x8] sm:$0xf0]  ;;  %v1769_v46 = vld [vmem:[%s2649_s3 + $0x84] sm:$0xf]  ;;  %v1526_v54 = vor.u32 %v1770_v41, %v1525_v37 }
  0x3f   : > { %835 = vmatpush.bf16.msrb.mxu1 %v1550_v50  ;;  %849 = vmatpush.bf16.msrb.mxu2 %v1490_v57  ;;  %v325_v43 = vsel %vm323_vm4, %v305_v32, %v324_v27  ;;  %v1527_v47 = vld [vmem:[%s2649_s3 + $0x88] sm:$0xf0]  ;;  %v1466_v55 = vor.u32 %v1753_v42, %v1463_v45  ;;  %vm412_vm1 = vsmask.f32 7424  ;;  %v1677_v5 = vld [vmem:[%s2649_s3 + $0x270] sm:$0xf] }
  0x40   : > { %863 = vmatpush.bf16.msrb.mxu3 %v1554_v61  ;;  %v2400_v48 = vsel %vm2368_vm5, %v306_v33, %v313_v38  ;;  %326 = vst [vmem:[#allocation2 + $0x8] sm:$0xff] %v325_v43  ;;  %v329_v49 = vsel %vm283_vm8, %v315_v39, %v328_v23  ;;  %v402_v50 = vunpack.c.l.b16 %v325_v43  ;;  %v403_v51 = vunpack.c.h.b16 %v325_v43  ;;  %v1832_v6 = vld [vmem:[%s2649_s3 + $0x274] sm:$0xf0]  ;;  %v1679_v15 = vld [vmem:[%s2649_s3 + $0x278] sm:$0xf0] }
  0x41   : > { %v404_v52 = vunpack.c.l.b16 %v2400_v48  ;;  %v405_v53 = vunpack.c.h.b16 %v2400_v48  ;;  %330 = vst [vmem:[#allocation2] sm:$0x11] %v329_v49  ;;  %v1530_v56 = vor.u32 %v1769_v46, %v1527_v47  ;;  %v1847_v16 = vld [vmem:[%s2649_s3 + $0x2f4] sm:$0xf]  ;;  %v1743_v17 = vld [vmem:[%s2649_s3 + $0x2f8] sm:$0xf0]  ;;  %v1678_v20 = vor.u32 %v1832_v6, %v1677_v5 }
  0x42   : > { %822 = vmatpush.bf16.msrb.mxu0 %v1478_v8  ;;  %v1741_v8 = vld [vmem:[%s2649_s3 + $0x2f0] sm:$0xf]  ;;  %v1669_v22 = vld [vmem:[%s2649_s3 + $0x260] sm:$0xf]  ;;  %v1830_v23 = vld [vmem:[%s2649_s3 + $0x264] sm:$0xf0]  ;;  %v1746_v27 = vor.u32 %v1847_v16, %v1743_v17 }
  0x43   : > { %836 = vmatpush.bf16.msrb.mxu1 %v1542_v13  ;;  %850 = vmatpush.bf16.msrb.mxu2 %v1482_v14  ;;  %v2411_v7 = vpack.c.b16 %v404_v52, %v402_v50  ;;  %v2415_v3 = vpack.c.b16 %v405_v53, %v403_v51  ;;  %v1848_v13 = vld [vmem:[%s2649_s3 + $0x2f4] sm:$0xf0]  ;;  %v1831_v14 = vld [vmem:[%s2649_s3 + $0x274] sm:$0xf]  ;;  %v1846_v29 = vld [vmem:[%s2649_s3 + $0x2e4] sm:$0xf0] }
  0x44   : > { %864 = vmatpush.bf16.msrb.mxu3 %v1546_v19  ;;  %v1742_v21 = vor.u32 %v1848_v13, %v1741_v8  ;;  %v1682_v26 = vor.u32 %v1831_v14, %v1679_v15  ;;  %v1829_v30 = vld [vmem:[%s2649_s3 + $0x264] sm:$0xf]  ;;  %v1671_v31 = vld [vmem:[%s2649_s3 + $0x268] sm:$0xf0]  ;;  %v1661_v36 = vld [vmem:[%s2649_s3 + $0x250] sm:$0xf] }
  0x45   : > { %v416_v57 = vshll.u32 %v2411_v7, 16  ;;  %v428_v58 = vshll.u32 %v2415_v3, 16  ;;  %v414_v60 = vshrl.u32 %v2411_v7, 16  ;;  %v426_v61 = vshrl.u32 %v2415_v3, 16  ;;  %v1845_v32 = vld [vmem:[%s2649_s3 + $0x2e4] sm:$0xf] }
  0x46   : > { %823 = vmatpush.bf16.msrb.mxu0 %v1470_v28  ;;  %v1733_v28 = vld [vmem:[%s2649_s3 + $0x2e0] sm:$0xf]  ;;  %v1735_v33 = vld [vmem:[%s2649_s3 + $0x2e8] sm:$0xf0]  ;;  %v1828_v37 = vld [vmem:[%s2649_s3 + $0x254] sm:$0xf0]  ;;  %v1674_v38 = vor.u32 %v1829_v30, %v1671_v31 }
  0x47   : > { %837 = vmatpush.bf16.msrb.mxu1 %v1534_v34  ;;  %851 = vmatpush.bf16.msrb.mxu2 %v1474_v35  ;;  %v418_v63 = vrot.slane %v416_v57, 1  ;;  %v430_v1 = vrot.slane %v428_v58, 1  ;;  %v1670_v34 = vor.u32 %v1830_v23, %v1669_v22  ;;  %v1734_v35 = vor.u32 %v1846_v29, %v1733_v28  ;;  %v1844_v41 = vld [vmem:[%s2649_s3 + $0x2d4] sm:$0xf0]  ;;  %v1827_v42 = vld [vmem:[%s2649_s3 + $0x254] sm:$0xf] }
  0x48   : > { %865 = vmatpush.bf16.msrb.mxu3 %v1538_v40  ;;  %v365_v59 = vld [vmem:[#allocation2] sm:$0x11]  ;;  %v1738_v39 = vor.u32 %v1845_v32, %v1735_v33  ;;  %v1725_v40 = vld [vmem:[%s2649_s3 + $0x2d0] sm:$0xf]  ;;  %v1663_v43 = vld [vmem:[%s2649_s3 + $0x258] sm:$0xf0]  ;;  %v1662_v46 = vor.u32 %v1828_v37, %v1661_v36 }
  0x49   : > { %v406_v62 = vunpack.c.l.b16 %v365_v59  ;;  %v407_v0 = vunpack.c.h.b16 %v365_v59  ;;  %v419_v9 = vor.u32 %v418_v63, %v414_v60  ;;  %v431_v11 = vor.u32 %v430_v1, %v426_v61  ;;  %v1727_v45 = vld [vmem:[%s2649_s3 + $0x2d8] sm:$0xf0]  ;;  %v1653_v49 = vld [vmem:[%s2649_s3 + $0x240] sm:$0xf]  ;;  %v1826_v50 = vld [vmem:[%s2649_s3 + $0x244] sm:$0xf0] }
  0x4a   : > { %824 = vmatpush.bf16.msrb.mxu0 %v1462_v44  ;;  %v1843_v44 = vld [vmem:[%s2649_s3 + $0x2d4] sm:$0xf]  ;;  %v1726_v47 = vor.u32 %v1844_v41, %v1725_v40  ;;  %v1666_v51 = vor.u32 %v1827_v42, %v1663_v43  ;;  %v1825_v57 = vld [vmem:[%s2649_s3 + $0x244] sm:$0xf]  ;;  %v1655_v58 = vld [vmem:[%s2649_s3 + $0x248] sm:$0xf0]  ;;  %v1654_v61 = vor.u32 %v1826_v50, %v1653_v49 }
  0x4b   : > { %838 = vmatpush.bf16.msrb.mxu1 %v1526_v54  ;;  %852 = vmatpush.bf16.msrb.mxu2 %v1466_v55  ;;  %v2421_v2 = vpack.c.b16 %v406_v62, %v406_v62  ;;  %v2423_v4 = vpack.c.b16 %v407_v0, %v407_v0  ;;  %v1730_v54 = vor.u32 %v1843_v44, %v1727_v45  ;;  %v1717_v55 = vld [vmem:[%s2649_s3 + $0x2c0] sm:$0xf]  ;;  %v1841_v59 = vld [vmem:[%s2649_s3 + $0x2c4] sm:$0xf]  ;;  %v1719_v60 = vld [vmem:[%s2649_s3 + $0x2c8] sm:$0xf0] }
  0x4c   : > { %866 = vmatpush.bf16.msrb.mxu3 %v1530_v56  ;;  %v1842_v56 = vld [vmem:[%s2649_s3 + $0x2c4] sm:$0xf0]  ;;  %v1645_v63 = vld [vmem:[%s2649_s3 + $0x230] sm:$0xf]  ;;  %v1824_v0 = vld [vmem:[%s2649_s3 + $0x234] sm:$0xf0]  ;;  %v1658_v1 = vor.u32 %v1825_v57, %v1655_v58  ;;  %v1722_v5 = vor.u32 %v1841_v59, %v1719_v60 }
  0x4d   : > { %v421_v10 = vshll.u32 %v2421_v2, 16  ;;  %v433_v12 = vshll.u32 %v2423_v4, 16  ;;  %v1718_v62 = vor.u32 %v1842_v56, %v1717_v55  ;;  %v1709_v6 = vld [vmem:[%s2649_s3 + $0x2b0] sm:$0xf]  ;;  %v1840_v8 = vld [vmem:[%s2649_s3 + $0x2b4] sm:$0xf0]  ;;  %v1646_v13 = vor.u32 %v1824_v0, %v1645_v63 }
  0x4e   : > { %v1710_v14 = vor.u32 %v1840_v8, %v1709_v6  ;;  %v1637_v15 = vld [vmem:[%s2649_s3 + $0x220] sm:$0xf]  ;;  %v1822_v16 = vld [vmem:[%s2649_s3 + $0x224] sm:$0xf0]  ;;  %v1639_v23 = vld [vmem:[%s2649_s3 + $0x228] sm:$0xf0] }
  0x4f   : > { %v423_v18 = vrot.slane %v421_v10, 1  ;;  %v435_v19 = vrot.slane %v433_v12, 1  ;;  %v1647_v10 = vld [vmem:[%s2649_s3 + $0x238] sm:$0xf0]  ;;  %v1701_v17 = vld [vmem:[%s2649_s3 + $0x2a0] sm:$0xf] }
  0x50   : > { %v1711_v12 = vld [vmem:[%s2649_s3 + $0x2b8] sm:$0xf0]  ;;  %v873_v22 = vld [vmem:[#allocation2 + $0x8] sm:$0xee]  ;;  %v1820_v28 = vld [vmem:[%s2649_s3 + $0x214] sm:$0xf0] }
  0x51   : > { %v424_v24 = vsel %vm412_vm1, %v419_v9, %v423_v18  ;;  %v436_v25 = vsel %vm412_vm1, %v431_v11, %v435_v19  ;;  %v1823_v9 = vld [vmem:[%s2649_s3 + $0x234] sm:$0xf]  ;;  %v908_v29 = vunpack.c.l.b16 %v873_v22  ;;  %v909_v30 = vunpack.c.h.b16 %v873_v22  ;;  %v1836_v33 = vld [vmem:[%s2649_s3 + $0x294] sm:$0xf0]  ;;  %v1695_v37 = vld [vmem:[%s2649_s3 + $0x298] sm:$0xf0] }
  0x52   : > { %607 = vmatmul.bf16.vlgmr.msra.gmra.mxu0 %v424_v24  ;;  %635 = vmatmul.bf16.vlgmr.msra.gmra.mxu2 %v424_v24  ;;  %v1839_v11 = vld [vmem:[%s2649_s3 + $0x2b4] sm:$0xf]  ;;  %v1650_v18 = vor.u32 %v1823_v9, %v1647_v10  ;;  %v1837_v24 = vld [vmem:[%s2649_s3 + $0x2a4] sm:$0xf]  ;;  %v1818_v41 = vld [vmem:[%s2649_s3 + $0x204] sm:$0xf0] }
  0x53   : > { %621 = vmatmul.bf16.vlgmr.msra.gmra.mxu1 %v436_v25  ;;  %649 = vmatmul.bf16.vlgmr.msra.gmra.mxu3 %v436_v25  ;;  %v1714_v19 = vor.u32 %v1839_v11, %v1711_v12  ;;  %v1703_v25 = vld [vmem:[%s2649_s3 + $0x2a8] sm:$0xf0]  ;;  %v1835_v36 = vld [vmem:[%s2649_s3 + $0x294] sm:$0xf]  ;;  %v1685_v42 = vld [vmem:[%s2649_s3 + $0x280] sm:$0xf]  ;;  %v910_v44 = vpack.c.b16 %v404_v52, %v908_v29  ;;  %v911_v45 = vpack.c.b16 %v405_v53, %v909_v30 }
  0x54   : > { %1081 = vmatpush.bf16.msra.mxu0 %v1678_v20  ;;  %1095 = vmatpush.bf16.msra.mxu1 %v1742_v21  ;;  %v1838_v20 = vld [vmem:[%s2649_s3 + $0x2a4] sm:$0xf0]  ;;  %v1821_v21 = vld [vmem:[%s2649_s3 + $0x224] sm:$0xf]  ;;  %v1706_v32 = vor.u32 %v1837_v24, %v1703_v25  ;;  %v1623_v50 = vld [vmem:[%s2649_s3 + $0x208] sm:$0xf0] }
  0x55   : > { %1109 = vmatpush.bf16.msra.mxu2 %v1682_v26  ;;  %1123 = vmatpush.bf16.msra.mxu3 %v1746_v27  ;;  %v1638_v26 = vor.u32 %v1822_v16, %v1637_v15  ;;  %v1629_v27 = vld [vmem:[%s2649_s3 + $0x210] sm:$0xf]  ;;  %v1642_v31 = vor.u32 %v1821_v21, %v1639_v23  ;;  %v1834_v43 = vld [vmem:[%s2649_s3 + $0x284] sm:$0xf0]  ;;  %v1817_v49 = vld [vmem:[%s2649_s3 + $0x204] sm:$0xf] }
  0x56   : > { %v1687_v48 = vld [vmem:[%s2649_s3 + $0x288] sm:$0xf0]  ;;  %v1686_v53 = vor.u32 %v1834_v43, %v1685_v42  ;;  %v914_v55 = vrot.slane %v2421_v2, 1  ;;  %v916_v56 = vrot.slane %v911_v45, 1  ;;  %v917_v57 = vrot.slane %v2423_v4, 1 }
  0x57   : > { %v1626_v58 = vor.u32 %v1817_v49, %v1623_v50 }
  0x58   : > { %1082 = vmatpush.bf16.msra.mxu0 %v1670_v34  ;;  %1096 = vmatpush.bf16.msra.mxu1 %v1734_v35  ;;  %v1819_v34 = vld [vmem:[%s2649_s3 + $0x214] sm:$0xf]  ;;  %v1631_v35 = vld [vmem:[%s2649_s3 + $0x218] sm:$0xf0] }
  0x59   : > { %1110 = vmatpush.bf16.msra.mxu2 %v1674_v38  ;;  %1124 = vmatpush.bf16.msra.mxu3 %v1738_v39  ;;  %v1630_v38 = vor.u32 %v1820_v28, %v1629_v27  ;;  %v1621_v39 = vld [vmem:[%s2649_s3 + $0x200] sm:$0xf] }
  0x5a   : > { %v1622_v52 = vor.u32 %v1818_v41, %v1621_v39 }
  0x5c   : > { %1083 = vmatpush.bf16.msra.mxu0 %v1662_v46  ;;  %1097 = vmatpush.bf16.msra.mxu1 %v1726_v47  ;;  %v1634_v46 = vor.u32 %v1819_v34, %v1631_v35  ;;  %v1698_v47 = vor.u32 %v1835_v36, %v1695_v37 }
  0x5d   : > { %1111 = vmatpush.bf16.msra.mxu2 %v1666_v51  ;;  %1125 = vmatpush.bf16.msra.mxu3 %v1730_v54  ;;  %v1833_v51 = vld [vmem:[%s2649_s3 + $0x284] sm:$0xf]  ;;  %v913_v54 = vrot.slane %v910_v44, 1 }
  0x5e   : > { %v1690_v59 = vor.u32 %v1833_v51, %v1687_v48 }
  0x5f   : > { %v915_v60 = vsel %vm912_vm3, %v913_v54, %v914_v55 }
  0x60   : > { %1084 = vmatpush.bf16.msra.mxu0 %v1654_v61  ;;  %1098 = vmatpush.bf16.msra.mxu1 %v1718_v62  ;;  %v918_v61 = vsel %vm912_vm3, %v916_v56, %v917_v57 }
  0x61   : > { %1112 = vmatpush.bf16.msra.mxu2 %v1658_v1  ;;  %1126 = vmatpush.bf16.msra.mxu3 %v1722_v5 }
  0x62   : > { %825 = vmatmul.bf16.vlgmr.msrb.gmra.mxu0 %v2411_v7  ;;  %853 = vmatmul.bf16.vlgmr.msrb.gmra.mxu2 %v2411_v7  ;;  %v1702_v7 = vor.u32 %v1838_v20, %v1701_v17 }
  0x63   : > { %839 = vmatmul.bf16.vlgmr.msrb.gmra.mxu1 %v2415_v3  ;;  %867 = vmatmul.bf16.vlgmr.msrb.gmra.mxu3 %v2415_v3  ;;  %v1693_v3 = vld [vmem:[%s2649_s3 + $0x290] sm:$0xf] }
  0x64   : > { %1085 = vmatpush.bf16.msra.mxu0 %v1646_v13  ;;  %1099 = vmatpush.bf16.msra.mxu1 %v1710_v14  ;;  %v1694_v40 = vor.u32 %v1836_v33, %v1693_v3 }
  0x65   : > { %1113 = vmatpush.bf16.msra.mxu2 %v1650_v18  ;;  %1127 = vmatpush.bf16.msra.mxu3 %v1714_v19 }
  0x68   : > { %1086 = vmatpush.bf16.msra.mxu0 %v1638_v26  ;;  %1100 = vmatpush.bf16.msra.mxu1 %v1702_v7 }
  0x69   : > { %1114 = vmatpush.bf16.msra.mxu2 %v1642_v31  ;;  %1128 = vmatpush.bf16.msra.mxu3 %v1706_v32 }
  0x6c   : > { %1087 = vmatpush.bf16.msra.mxu0 %v1630_v38  ;;  %1101 = vmatpush.bf16.msra.mxu1 %v1694_v40 }
  0x6d   : > { %1115 = vmatpush.bf16.msra.mxu2 %v1634_v46  ;;  %1129 = vmatpush.bf16.msra.mxu3 %v1698_v47 }
  0x70   : > { %1088 = vmatpush.bf16.msra.mxu0 %v1622_v52  ;;  %1102 = vmatpush.bf16.msra.mxu1 %v1686_v53 }
  0x71   : > { %1116 = vmatpush.bf16.msra.mxu2 %v1626_v58  ;;  %1130 = vmatpush.bf16.msra.mxu3 %v1690_v59 }
  0x73   : > { %1089 = vmatmul.bf16.vlgmr.msra.gmra.mxu0 %v915_v60  ;;  %1103 = vmatmul.bf16.vlgmr.msra.gmra.mxu1 %v918_v61 }
  0x74   : > { %1117 = vmatmul.bf16.vlgmr.msra.gmra.mxu2 %v915_v60  ;;  %1131 = vmatmul.bf16.vlgmr.msra.gmra.mxu3 %v918_v61 }
  0xcf   : > { %v608_v62 = vpop.f32.mrf.mxu0 }
  0xd0   : > { %v622_v2 = vpop.f32.mrf.mxu1 }
  0xd1   : > { %v623_v14 = vadd.f32 %v622_v2, %v608_v62 }
  0xd5   : > { %v636_v63 = vpop.f32.mrf.mxu2 }
  0xd6   : > { %v650_v0 = vpop.f32.mrf.mxu3 }
  0xd7   : > { %v610_v4 = vpop.f32.mrf.mxu0  ;;  %v651_v17 = vadd.f32 %v650_v0, %v636_v63 }
  0xd8   : > { %v624_v1 = vpop.f32.mrf.mxu1 }
  0xd9   : > { %v625_v20 = vadd.f32 %v624_v1, %v610_v4 }
  0xdd   : > { %v638_v5 = vpop.f32.mrf.mxu2 }
  0xde   : > { %v652_v6 = vpop.f32.mrf.mxu3 }
  0xdf   : > { %v826_v8 = vpop.f32.mrf.mxu0  ;;  %v653_v33 = vadd.f32 %v652_v6, %v638_v5  ;;  %v1165_v6 = vlaneseq }
  0xe0   : > { %v840_v9 = vpop.f32.mrf.mxu1  ;;  %v827_v21 = vadd.f32 %v826_v8, %v623_v14 }
  0xe1   : > { %vm1167_vm6 = vcmp.lt.s32.totalorder %v1165_v6, 256 }
  0xe2   : > { %v841_v25 = vadd.f32 %v840_v9, %v827_v21 }
  0xe5   : > { %v854_v10 = vpop.f32.mrf.mxu2 }
  0xe6   : > { %v868_v11 = vpop.f32.mrf.mxu3  ;;  %v855_v22 = vadd.f32 %v854_v10, %v651_v17 }
  0xe7   : > { %v828_v12 = vpop.f32.mrf.mxu0 }
  0xe8   : > { %v842_v13 = vpop.f32.mrf.mxu1  ;;  %v829_v23 = vadd.f32 %v828_v12, %v625_v20  ;;  %v869_v27 = vadd.f32 %v868_v11, %v855_v22 }
  0xea   : > { %v843_v31 = vadd.f32 %v842_v13, %v829_v23 }
  0xed   : > { %v856_v15 = vpop.f32.mrf.mxu2 }
  0xee   : > { %v870_v16 = vpop.f32.mrf.mxu3  ;;  %v857_v36 = vadd.f32 %v856_v15, %v653_v33 }
  0xf0   : > { %v1090_v18 = vpop.f32.mrf.mxu0  ;;  %v1104_v19 = vpop.f32.mrf.mxu1  ;;  %v871_v45 = vadd.f32 %v870_v16, %v857_v36 }
  0xf1   : > { %v1105_v24 = vadd.f32 %v1104_v19, %v1090_v18 }
  0xf3   : > { %v1137_v32 = vadd.f32 %v1105_v24, %v841_v25 }
  0xf5   : > { %v1170_v38 = vmul.f32 %v1137_v32, %v1137_v32 }
  0xf7   : > { %v1118_v26 = vpop.f32.mrf.mxu2  ;;  %v1132_v7 = vpop.f32.mrf.mxu3 }
  0xf8   : > { %v1133_v28 = vadd.f32 %v1132_v7, %v1118_v26  ;;  %v1092_v29 = vpop.f32.mrf.mxu0  ;;  %v1106_v30 = vpop.f32.mrf.mxu1 }
  0xf9   : > { %v1107_v3 = vadd.f32 %v1106_v30, %v1092_v29 }
  0xfa   : > { %v1138_v34 = vadd.f32 %v1133_v28, %v869_v27 }
  0xfb   : > { %v1139_v35 = vadd.f32 %v1107_v3, %v843_v31 }
  0xfc   : > { %v1141_v37 = vpack.c.bf16 %v1138_v34, %v1137_v32  ;;  %v1171_v51 = vmul.f32 %v1138_v34, %v1138_v34 }
  0xfd   : > { %v1145_v39 = vadd.f32 %v1139_v35, %v1137_v32  ;;  %v1172_v40 = vmul.f32 %v1139_v35, %v1139_v35 }
  0xfe   : > { %1143 = vst [vmem:[%s239_s21] sm:$0xff] %v1141_v37 }
  0xff   : > { %v1146_v41 = vrot.slane %v1145_v39, 4  ;;  %v1174_v42 = vadd.f32 %v1172_v40, %v1170_v38  ;;  %v1120_v43 = vpop.f32.mrf.mxu2  ;;  %v1134_v44 = vpop.f32.mrf.mxu3 }
 0x100   : > { %v1135_v46 = vadd.f32 %v1134_v44, %v1120_v43 }
 0x101   : > { %v1175_v47 = vrot.slane %v1174_v42, 4  ;;  %v1147_v49 = vadd.f32 %v1146_v41, %v1145_v39 }
 0x102   : > { %v1140_v50 = vadd.f32 %v1135_v46, %v871_v45 }
 0x103   : > { %v1176_v48 = vadd.f32 %v1175_v47, %v1174_v42  ;;  %v1148_v55 = vrot.slane %v1147_v49, 2 }
 0x104   : > { %v1142_v52 = vpack.c.bf16 %v1140_v50, %v1139_v35  ;;  %v1152_v53 = vadd.f32 %v1140_v50, %v1138_v34  ;;  %v1173_v54 = vmul.f32 %v1140_v50, %v1140_v50 }
 0x105   : > { %v1177_v58 = vrot.slane %v1176_v48, 2  ;;  %v1149_v61 = vadd.f32 %v1148_v55, %v1147_v49 }
 0x106   : > { %1144 = vst [vmem:[%s239_s21 + $0x8] sm:$0xff] %v1142_v52  ;;  %v1153_v56 = vrot.slane %v1152_v53, 4  ;;  %v1181_v57 = vadd.f32 %v1173_v54, %v1171_v51 }
 0x107   : > { %v1178_v63 = vadd.f32 %v1177_v58, %v1176_v48  ;;  %v1150_v1 = vrot.slane %v1149_v61, 1 }
 0x108   : > { %v1154_v59 = vadd.f32 %v1153_v56, %v1152_v53  ;;  %v1182_v60 = vrot.slane %v1181_v57, 4 }
 0x109   : > { %v1179_v9 = vrot.slane %v1178_v63, 1  ;;  %v1151_v12 = vadd.f32 %v1150_v1, %v1149_v61 }
 0x10a   : > { %v1155_v62 = vrot.slane %v1154_v59, 2  ;;  %v1183_v2 = vadd.f32 %v1182_v60, %v1181_v57 }
 0x10b   : > { %v1180_v15 = vadd.f32 %v1179_v9, %v1178_v63 }
 0x10c   : > { %v1156_v0 = vadd.f32 %v1155_v62, %v1154_v59  ;;  %v1184_v4 = vrot.slane %v1183_v2, 2 }
 0x10e   : > { %v1157_v5 = vrot.slane %v1156_v0, 1  ;;  %v1185_v8 = vadd.f32 %v1184_v4, %v1183_v2 }
 0x110   : > { %v1158_v10 = vadd.f32 %v1157_v5, %v1156_v0  ;;  %v1186_v11 = vrot.slane %v1185_v8, 1 }
 0x112   : > { %v1161_v13 = vrot.slane %v1158_v10, 7  ;;  %v1187_v14 = vadd.f32 %v1186_v11, %v1185_v8 }
 0x114   : > { %v1163_v16 = vsel %vm277_vm0, %v1151_v12, %v1161_v13  ;;  %v1190_v17 = vrot.slane %v1187_v14, 7 }
 0x115   : > { %1169 = vst.msk [vmem:[%s245_s24] ss:$2 sm:$0x3] %vm1167_vm6, %v1163_v16 }
 0x116   : > { %v1191_v18 = vsel %vm277_vm0, %v1180_v15, %v1190_v17 }
 0x117   : > { %1747 = vst.msk [vmem:[%s245_s24 + $0x1] ss:$2 sm:$0x3] %vm1167_vm6, %v1191_v18 }
 0x118 PF: > { %s16_s18 = sadd.s32 1, %s1863_s18  }
 0x119   : > { %p13_p5 = scmp.ge.s32.totalorder %s16_s18, 4  }
 0x11b   :  { %15 = sbr.rel (!%p13_p5) target bundleno = 1 (0x1), region = 81 }

</bundles_post_ra>
